<compile_context>
chip_gen: v7x
topology: tpu7x:2x2x1
jax: 0.10.0
libtpu: 0.0.40
codegen_flags: <defaults>
</compile_context>

<pallas_src>
import functools
import math

import jax
import jax.numpy as jnp
from jax.experimental import pallas as pl
from jax.experimental.pallas import tpu as pltpu

K = 16  # neighbours used by the torch reference's argKmin truncation


def _cubic_conv(s):
    """Catmull-Rom cubic kernel, Horner form. Matches SplineNetwork.cubic_conv:
    |s| == 1 and |s| >= 2 both evaluate to exactly 0."""
    a = jnp.abs(s)
    p1 = (1.5 * a - 2.5) * (a * a) + 1.0
    p2 = ((-0.5 * a + 2.5) * a - 4.0) * a + 2.0
    return jnp.where(a < 1.0, p1, jnp.where(a < 2.0, p2, 0.0))


def _spline_kernel(xx_ref, xy_ref, cx_ref, cy_ref, w_ref, out_ref, *,
                   inv_h_x, inv_h_y):
    # xx/xy: (1, TB) lane-dense query coords; cx/cy: (N, 1) grid-axis coords;
    # w: (N, N) with w[i, j] paired with (ys[i], xs[j]).
    cx_q = _cubic_conv((xx_ref[...] - cx_ref[...]) * inv_h_x)   # (N, TB)
    cy_q = _cubic_conv((xy_ref[...] - cy_ref[...]) * inv_h_y)   # (N, TB)
    # Reduce over the x-axis control points on the MXU -> (N, TB).
    t = jnp.dot(w_ref[...], cx_q, preferred_element_type=jnp.float32)
    # Reduce over the y-axis control points (sublane sum) -> (1, TB).
    out_ref[...] = jnp.sum(t * cy_q, axis=0, keepdims=True)


def get_mgrid(sidelen, dim=2):
    """JAX port of the reference get_mgrid (indexing='xy')."""
    axes = [jnp.linspace(-1.0, 1.0, sidelen, dtype=jnp.float32)] * dim
    grids = jnp.meshgrid(*axes, indexing="xy")
    return jnp.stack(grids, axis=-1)


class SplineNetwork:
    """JAX / Pallas version of the PyTorch SplineNetwork (forward only)."""

    def __init__(self, N, circle=False, key=None):
        self.N = N
        # torch init is zeros (-> identically-zero output); use a deterministic
        # random init with the same (N*N, 1) shape so the test is meaningful.
        if key is None:
            key = jax.random.PRNGKey(0)
        self.weights = jax.random.normal(key, (N * N, 1), dtype=jnp.float32)
        cp = get_mgrid(sidelen=N, dim=2).reshape(-1, 2)
        if circle:
            cp = cp / math.sqrt(2)
        self.control_points = cp
        # grid spacings, exactly as in the reference forward()
        self.h_x = float(jnp.abs(cp[0, 0] - cp[1, 0]))
        self.h_y = float(jnp.abs(cp[0, 1] - cp[N, 1]))

    def __call__(self, x, *, tile_b=2048):
        # tile_b = queries per grid step (lane tile). Per-tile live data is a
        # handful of (N, tile_b) f32 temps, so 2048 is comfortably within VMEM
        # on v5e/v6e/v7x; sweep up to 4096-8192 for very large query batches.
        assert tile_b % 128 == 0
        old_shape = x.shape
        is3d = x.ndim == 3
        if is3d:
            x = x.reshape(-1, 2)
        x = x.astype(jnp.float32)

        B = x.shape[0]
        Bp = ((B + tile_b - 1) // tile_b) * tile_b
        xt = jnp.pad(x, ((0, Bp - B), (0, 0))).T      # (2, Bp), lane-dense
        xx = xt[0:1, :]                               # (1, Bp)
        xy = xt[1:2, :]                               # (1, Bp)

        N = self.N
        # control_points[m] = (xs[m % N], ys[m // N]); extract the two axes.
        cx = self.control_points[:, 0].reshape(N, N)[0, :].reshape(N, 1)  # xs
        cy = self.control_points[:, 1].reshape(N, N)[:, 0].reshape(N, 1)  # ys
        # weights[m, 0] pairs with (ys[m // N], xs[m % N]) -> W[i, j].
        w = self.weights.reshape(N, N)

        kernel = functools.partial(_spline_kernel,
                                   inv_h_x=1.0 / self.h_x,
                                   inv_h_y=1.0 / self.h_y)
        out = pl.pallas_call(
            kernel,
            out_shape=jax.ShapeDtypeStruct((1, Bp), jnp.float32),
            grid_spec=pltpu.PrefetchScalarGridSpec(
                num_scalar_prefetch=0,
                grid=(Bp // tile_b,),
                in_specs=[
                    pl.BlockSpec((1, tile_b), lambda i: (0, i)),   # xx
                    pl.BlockSpec((1, tile_b), lambda i: (0, i)),   # xy
                    pl.BlockSpec((N, 1), lambda i: (0, 0)),        # cx (xs)
                    pl.BlockSpec((N, 1), lambda i: (0, 0)),        # cy (ys)
                    pl.BlockSpec((N, N), lambda i: (0, 0)),        # weights
                ],
                out_specs=pl.BlockSpec((1, tile_b), lambda i: (0, i)),
            ),
            compiler_params=pltpu.CompilerParams(
                dimension_semantics=("parallel",),
                vmem_limit_bytes=32 * 1024 * 1024),
        )(xx, xy, cx, cy, w)

        output = out[0, :B]
        if is3d:
            output = output.reshape(old_shape[0], old_shape[1], 1)
        return output, x


def _reference_full(x, control_points, weights, N):
    """Pure-JAX full-support cubic interpolation (what the kernel computes)."""
    h_x = jnp.abs(control_points[0, 0] - control_points[1, 0])
    h_y = jnp.abs(control_points[0, 1] - control_points[N, 1])
    sx = (x[:, None, 0] - control_points[None, :, 0]) / h_x
    sy = (x[:, None, 1] - control_points[None, :, 1]) / h_y
    conv = _cubic_conv(sx) * _cubic_conv(sy)
    return jnp.sum(conv * weights[None, :, 0], axis=1)


def _reference_argkmin(x, control_points, weights, N):
    """Pure-JAX mirror of the torch forward (argKmin K=16 -> gather -> sum)."""
    d2 = jnp.sum((x[:, None, :] - control_points[None, :, :]) ** 2, axis=-1)
    _, idx = jax.lax.top_k(-d2, K)
    nbrs = control_points[idx]
    h_x = jnp.abs(control_points[0, 0] - control_points[1, 0])
    h_y = jnp.abs(control_points[0, 1] - control_points[N, 1])
    cx = _cubic_conv((x[:, None, 0] - nbrs[..., 0]) / h_x)
    cy = _cubic_conv((x[:, None, 1] - nbrs[..., 1]) / h_y)
    return jnp.sum(weights[idx, 0] * cx * cy, axis=1)


if __name__ == "__main__":
    N = 16        # 16x16 -> 256 control points
    B = 4096      # query points -> two 2048-wide lane tiles (exercises grid)

    key = jax.random.PRNGKey(0)
    k_w, k_x = jax.random.split(key)

    net = SplineNetwork(N, circle=False, key=k_w)
    x = jax.random.uniform(k_x, (B, 2), dtype=jnp.float32,
                           minval=-1.0, maxval=1.0)

    output, x_out = net(x)
    output = jax.block_until_ready(output)
    assert output.shape == (B,)

    # Exact check against what the kernel computes (full cubic-support sum).
    ref_full = jax.block_until_ready(
        _reference_full(x, net.control_points, net.weights, N))
    assert jnp.allclose(output, ref_full, atol=1e-4, rtol=1e-4), (
        float(jnp.max(jnp.abs(output - ref_full))))

    # Fidelity to the torch argKmin forward: identical except for queries with
    # both fractional cell offsets > 2/3, where argKmin drops a far-corner
    # point whose cubic weight is <= ~1.4e-3 (loose tolerance covers that).
    ref_knn = jax.block_until_ready(
        _reference_argkmin(x, net.control_points, net.weights, N))
    assert jnp.allclose(output, ref_knn, atol=2e-2), (
        float(jnp.max(jnp.abs(output - ref_knn))))

    print("KERNEL_OK")
</pallas_src>

<mosaic_0001>
module attributes {stable_mosaic.version = 11 : i64} {
  func.func @_spline_kernel(%arg0: i32, %arg1: memref<1x2048xf32, #tpu.memory_space<vmem>>, %arg2: memref<1x2048xf32, #tpu.memory_space<vmem>>, %arg3: memref<16x1xf32, #tpu.memory_space<vmem>>, %arg4: memref<16x1xf32, #tpu.memory_space<vmem>>, %arg5: memref<16x16xf32, #tpu.memory_space<vmem>>, %arg6: memref<1x2048xf32, #tpu.memory_space<vmem>>) attributes {dimension_semantics = [#tpu.dimension_semantics<parallel>], iteration_bounds = array<i64: 2>, scalar_prefetch = 0 : i64, scratch_operands = 0 : i64, tpu.core_type = #tpu.core_type<tc>, window_params = [{transform_indices = @transform_0, window_bounds = array<i64: 1, 2048>}, {transform_indices = @transform_1, window_bounds = array<i64: 1, 2048>}, {pipeline_mode = #tpu.pipeline_mode<synchronous>, transform_indices = @transform_2, window_bounds = array<i64: 16, 1>}, {pipeline_mode = #tpu.pipeline_mode<synchronous>, transform_indices = @transform_3, window_bounds = array<i64: 16, 1>}, {pipeline_mode = #tpu.pipeline_mode<synchronous>, transform_indices = @transform_4, window_bounds = array<i64: 16, 16>}, {transform_indices = @transform_5, window_bounds = array<i64: 1, 2048>}]} {
    %c0 = arith.constant 0 : index
    %c0_0 = arith.constant 0 : index
    %0 = vector.load %arg1[%c0, %c0_0] : memref<1x2048xf32, #tpu.memory_space<vmem>>, vector<1x2048xf32>
    %c0_1 = arith.constant 0 : index
    %c0_2 = arith.constant 0 : index
    %1 = vector.load %arg3[%c0_1, %c0_2] : memref<16x1xf32, #tpu.memory_space<vmem>>, vector<16x1xf32>
    %2 = vector.broadcast %0 : vector<1x2048xf32> to vector<16x2048xf32>
    %3 = vector.broadcast %1 : vector<16x1xf32> to vector<16x2048xf32>
    %4 = arith.subf %2, %3 : vector<16x2048xf32>
    %cst = arith.constant 7.50000048 : f32
    %5 = vector.broadcast %cst : f32 to vector<16x2048xf32>
    %6 = arith.mulf %4, %5 : vector<16x2048xf32>
    %7 = math.absf %6 : vector<16x2048xf32>
    %cst_3 = arith.constant 1.500000e+00 : f32
    %8 = vector.broadcast %cst_3 : f32 to vector<16x2048xf32>
    %9 = arith.mulf %8, %7 : vector<16x2048xf32>
    %cst_4 = arith.constant 2.500000e+00 : f32
    %10 = vector.broadcast %cst_4 : f32 to vector<16x2048xf32>
    %11 = arith.subf %9, %10 : vector<16x2048xf32>
    %12 = arith.mulf %7, %7 : vector<16x2048xf32>
    %13 = arith.mulf %11, %12 : vector<16x2048xf32>
    %cst_5 = arith.constant 1.000000e+00 : f32
    %14 = vector.broadcast %cst_5 : f32 to vector<16x2048xf32>
    %15 = arith.addf %13, %14 : vector<16x2048xf32>
    %cst_6 = arith.constant -5.000000e-01 : f32
    %16 = vector.broadcast %cst_6 : f32 to vector<16x2048xf32>
    %17 = arith.mulf %16, %7 : vector<16x2048xf32>
    %cst_7 = arith.constant 2.500000e+00 : f32
    %18 = vector.broadcast %cst_7 : f32 to vector<16x2048xf32>
    %19 = arith.addf %17, %18 : vector<16x2048xf32>
    %20 = arith.mulf %19, %7 : vector<16x2048xf32>
    %cst_8 = arith.constant 4.000000e+00 : f32
    %21 = vector.broadcast %cst_8 : f32 to vector<16x2048xf32>
    %22 = arith.subf %20, %21 : vector<16x2048xf32>
    %23 = arith.mulf %22, %7 : vector<16x2048xf32>
    %cst_9 = arith.constant 2.000000e+00 : f32
    %24 = vector.broadcast %cst_9 : f32 to vector<16x2048xf32>
    %25 = arith.addf %23, %24 : vector<16x2048xf32>
    %cst_10 = arith.constant 1.000000e+00 : f32
    %26 = vector.broadcast %cst_10 : f32 to vector<16x2048xf32>
    %27 = arith.cmpf olt, %7, %26 : vector<16x2048xf32>
    %cst_11 = arith.constant 2.000000e+00 : f32
    %28 = vector.broadcast %cst_11 : f32 to vector<16x2048xf32>
    %29 = arith.cmpf olt, %7, %28 : vector<16x2048xf32>
    %cst_12 = arith.constant 0.000000e+00 : f32
    %30 = vector.broadcast %cst_12 : f32 to vector<16x2048xf32>
    %31 = arith.select %29, %25, %30 : vector<16x2048xi1>, vector<16x2048xf32>
    %32 = arith.select %27, %15, %31 : vector<16x2048xi1>, vector<16x2048xf32>
    %c0_13 = arith.constant 0 : index
    %c0_14 = arith.constant 0 : index
    %33 = vector.load %arg2[%c0_13, %c0_14] : memref<1x2048xf32, #tpu.memory_space<vmem>>, vector<1x2048xf32>
    %c0_15 = arith.constant 0 : index
    %c0_16 = arith.constant 0 : index
    %34 = vector.load %arg4[%c0_15, %c0_16] : memref<16x1xf32, #tpu.memory_space<vmem>>, vector<16x1xf32>
    %35 = vector.broadcast %33 : vector<1x2048xf32> to vector<16x2048xf32>
    %36 = vector.broadcast %34 : vector<16x1xf32> to vector<16x2048xf32>
    %37 = arith.subf %35, %36 : vector<16x2048xf32>
    %cst_17 = arith.constant 7.50000048 : f32
    %38 = vector.broadcast %cst_17 : f32 to vector<16x2048xf32>
    %39 = arith.mulf %37, %38 : vector<16x2048xf32>
    %40 = math.absf %39 : vector<16x2048xf32>
    %cst_18 = arith.constant 1.500000e+00 : f32
    %41 = vector.broadcast %cst_18 : f32 to vector<16x2048xf32>
    %42 = arith.mulf %41, %40 : vector<16x2048xf32>
    %cst_19 = arith.constant 2.500000e+00 : f32
    %43 = vector.broadcast %cst_19 : f32 to vector<16x2048xf32>
    %44 = arith.subf %42, %43 : vector<16x2048xf32>
    %45 = arith.mulf %40, %40 : vector<16x2048xf32>
    %46 = arith.mulf %44, %45 : vector<16x2048xf32>
    %cst_20 = arith.constant 1.000000e+00 : f32
    %47 = vector.broadcast %cst_20 : f32 to vector<16x2048xf32>
    %48 = arith.addf %46, %47 : vector<16x2048xf32>
    %cst_21 = arith.constant -5.000000e-01 : f32
    %49 = vector.broadcast %cst_21 : f32 to vector<16x2048xf32>
    %50 = arith.mulf %49, %40 : vector<16x2048xf32>
    %cst_22 = arith.constant 2.500000e+00 : f32
    %51 = vector.broadcast %cst_22 : f32 to vector<16x2048xf32>
    %52 = arith.addf %50, %51 : vector<16x2048xf32>
    %53 = arith.mulf %52, %40 : vector<16x2048xf32>
    %cst_23 = arith.constant 4.000000e+00 : f32
    %54 = vector.broadcast %cst_23 : f32 to vector<16x2048xf32>
    %55 = arith.subf %53, %54 : vector<16x2048xf32>
    %56 = arith.mulf %55, %40 : vector<16x2048xf32>
    %cst_24 = arith.constant 2.000000e+00 : f32
    %57 = vector.broadcast %cst_24 : f32 to vector<16x2048xf32>
    %58 = arith.addf %56, %57 : vector<16x2048xf32>
    %cst_25 = arith.constant 1.000000e+00 : f32
    %59 = vector.broadcast %cst_25 : f32 to vector<16x2048xf32>
    %60 = arith.cmpf olt, %40, %59 : vector<16x2048xf32>
    %cst_26 = arith.constant 2.000000e+00 : f32
    %61 = vector.broadcast %cst_26 : f32 to vector<16x2048xf32>
    %62 = arith.cmpf olt, %40, %61 : vector<16x2048xf32>
    %cst_27 = arith.constant 0.000000e+00 : f32
    %63 = vector.broadcast %cst_27 : f32 to vector<16x2048xf32>
    %64 = arith.select %62, %58, %63 : vector<16x2048xi1>, vector<16x2048xf32>
    %65 = arith.select %60, %48, %64 : vector<16x2048xi1>, vector<16x2048xf32>
    %c0_28 = arith.constant 0 : index
    %c0_29 = arith.constant 0 : index
    %66 = vector.load %arg5[%c0_28, %c0_29] : memref<16x16xf32, #tpu.memory_space<vmem>>, vector<16x16xf32>
    %cst_30 = arith.constant dense<0.000000e+00> : vector<16x2048xf32>
    %67 = tpu.matmul %66, %32, %cst_30 {dimension_numbers = #tpu.dot_dimension_numbers<[1], [0], [0], [1], [0, 0, 1, 1], [], []>} : vector<16x16xf32>, vector<16x2048xf32>, vector<16x2048xf32> -> vector<16x2048xf32>
    %68 = arith.mulf %67, %65 : vector<16x2048xf32>
    %cst_31 = arith.constant dense<0.000000e+00> : vector<2048xf32>
    %69 = vector.multi_reduction <add>, %68, %cst_31 [0] : vector<16x2048xf32> to vector<2048xf32>
    %70 = vector.shape_cast %69 : vector<2048xf32> to vector<1x2048xf32>
    %c0_32 = arith.constant 0 : index
    %c0_33 = arith.constant 0 : index
    %71 = vector.load %arg6[%c0_32, %c0_33] : memref<1x2048xf32, #tpu.memory_space<vmem>>, vector<1x2048xf32>
    tpu.vector_store %arg6[%c0_32, %c0_33], %70 {strides = array<i32>} : memref<1x2048xf32, #tpu.memory_space<vmem>>, vector<1x2048xf32>,
    return
  }
  func.func @transform_0(%arg0: i32) -> (i32, i32) {
    %c0_i32 = arith.constant 0 : i32
    %c0_i32_0 = arith.constant 0 : i32
    return %c0_i32, %arg0 : i32, i32
  }
  func.func @transform_1(%arg0: i32) -> (i32, i32) {
    %c0_i32 = arith.constant 0 : i32
    %c0_i32_0 = arith.constant 0 : i32
    return %c0_i32, %arg0 : i32, i32
  }
  func.func @transform_2(%arg0: i32) -> (i32, i32) {
    %c0_i32 = arith.constant 0 : i32
    %c0_i32_0 = arith.constant 0 : i32
    %c0_i32_1 = arith.constant 0 : i32
    return %c0_i32, %c0_i32_0 : i32, i32
  }
  func.func @transform_3(%arg0: i32) -> (i32, i32) {
    %c0_i32 = arith.constant 0 : i32
    %c0_i32_0 = arith.constant 0 : i32
    %c0_i32_1 = arith.constant 0 : i32
    return %c0_i32, %c0_i32_0 : i32, i32
  }
  func.func @transform_4(%arg0: i32) -> (i32, i32) {
    %c0_i32 = arith.constant 0 : i32
    %c0_i32_0 = arith.constant 0 : i32
    %c0_i32_1 = arith.constant 0 : i32
    return %c0_i32, %c0_i32_0 : i32, i32
  }
  func.func @transform_5(%arg0: i32) -> (i32, i32) {
    %c0_i32 = arith.constant 0 : i32
    %c0_i32_0 = arith.constant 0 : i32
    return %c0_i32, %arg0 : i32, i32
  }
}

</mosaic_0001>

<bundles_post_ra>
// kernel: tpu_custom_call.1
= control target key start
LH: loop header
LB: loop body
LE: loop exit
PB: predicated region body
PF: predicated region fallthrough
CT: control target
= control target key end

     0   :  { %10 = vsyncpa [#allocation3], 0  ;;  %s4400_s0 = inlined_call_operand.vmem [shape: f32[1,4096], index: 0, kind: input, shape index: {}]   ;;  %s4401_s1 = inlined_call_operand.hbm [shape: f32[1,4096], index: 1, kind: input, shape index: {}]   ;;  %s4402_s2 = inlined_call_operand.vmem [shape: f32[16,1], index: 2, kind: input, shape index: {}]   ;;  %s4403_s3 = inlined_call_operand.vmem [shape: f32[16,1], index: 3, kind: input, shape index: {}]   ;;  %s4404_s4 = inlined_call_operand.vmem [shape: f32[16,16], index: 4, kind: input, shape index: {}]   ;;  %s4405_s5 = inlined_call_operand.hbm [shape: f32[1,4096], index: 5, kind: output, shape index: {}]  }
   0x1   :  { %12 = vsyncpa [#allocation3 + $0x1], 0 }
   0x2   :  { %13 = vsyncpa [#allocation4], 0 }
   0x3   :  { %15 = vsyncpa [#allocation4 + $0x1], 0  ;;  %s2965_s18 = smov 0   ;;  %s2967_s19 = smov 0  }
   0x4   :  { %s2969_s20 = smov 0   ;;  %s2971_s21 = smov 0  }
   0x5 LB: > { %s2986_s22 = sadd.s32 4294967295, %s2928_s21   ;;  %s2587_s23 = sadd.s32 4294967294, %s2928_s21   ;;  %s2928_s21 = sphi %s2971_s21, %s4420_s21   ;;  %s2924_s20 = sphi %s2969_s20, %s4419_s20   ;;  %s2920_s19 = sphi %s2967_s19, %s4418_s19   ;;  %s2916_s18 = sphi %s2965_s18, %s4417_s18  }
   0x6   : > { %s2990_s24 = sadd.s32 1, %s2928_s21   ;;  %s54_s25 = sadd.s32 1, %s2924_s20 }
   0x7   : > { %s51_s26 = ssub.s32 %s2928_s21, %s2990_s24  ;;  %p61_p0 = scmp.ne.s32.totalorder %s2924_s20, %s2920_s19 }
   0x8   : > { %p52_p1 = scmp.eq.s32.totalorder %s51_s26, 0  ;;  %p62_p2 = scmp.eq.s32.totalorder %s2928_s21, 0 }
   0x9   : > { %p67_p3 = scmp.ne.s32.totalorder %s2920_s19, %s2916_s18  ;;  %p68_p4 = scmp.eq.s32.totalorder %s2986_s22, 0 }
   0xa   : > { %s3002_s27 = scalar_select %p52_p1, %s2924_s20, %s54_s25  }
   0xb   : > { %p3004_p5 = por %p62_p2, %p61_p0  ;;  %p3008_p6 = por %p68_p4, %p67_p3 }
   0xc   : > { %p154_p7 = scmp.eq.s32.totalorder %s2986_s22, 1  ;;  %p160_p8 = scmp.eq.s32.totalorder %s2587_s23, 1 }
   0xd   : > { %p2792_p10 = scmp.lt.s32.totalorder %s2928_s21, 2  ;;  %s197_s7 = sand.u32 1, %s2924_s20  }
   0xe   : > { %p3015_p11 = por %p154_p7, %p61_p0  ;;  %p3019_p12 = por %p160_p8, %p67_p3 }
   0xf   : > { %s2746_s8 = sshll.u32 %s2928_s21, 8  ;;  %s2590_s9 = sshll.u32 %s197_s7, 4 }
  0x10   : > { %s4409_s30 = scalar_select %p3015_p11, 1, 0 }
  0x11   : > { %s4410_s6 = scalar_select %p3019_p12, 1, 0 }
  0x12   : > { %s3028_s12 = scalar_lea.hbm %s4401_s1, %s2746_s8  ;;  %s201_s13 = scalar_lea.vmem [#allocation2], %s2590_s9 }
  0x13   : > { %s209_s14 = sshll.u32 %s201_s13, 4  ;;  %p3032_p13 = pnand %p2792_p10, %p3004_p5  ;;  %s3036_s14 = int_to_ptr.vmem [resolvable:$true] %s209_s14 }
  0x14   : > { %s198_s16 = scalar_lea.sflag [#allocation3], %s197_s7  ;;  %s2832_s17 = scalar_lea.hbm %s3028_s12, 256 }
  0x15   : > { %p2833_p2 = scmp.ne.s32.totalorder %s3028_s12, %s2832_s17  ;;  %p2834_p3 = pneg %p3032_p13 }
  0x16   : > { %s2837_s26 = scalar_lea.hbm %s4401_s1, 512  ;;  %p2838_p5 = scmp.lt.u32.totalorder %s3028_s12, %s4401_s1 }
  0x17   : > { %p2835_p4 = pnand %p2834_p3, %p2833_p2  ;;  %p2839_p8 = scmp.lt.u32.totalorder %s2837_s26, %s2832_s17 }
  0x18   : > { %p2841_p9 = scmp.lt.u32.totalorder %s2832_s17, %s3028_s12 }
  0x19   : > { %p2836_p7 = pneg %p2835_p4  ;;  %p2840_p10 = por %p2839_p8, %p2838_p5 }
  0x1b   : > { %p2842_p0 = por %p2841_p9, %p2840_p10 }
  0x1d   : > { %p2843_p1 = pnand %p2842_p0, %p2836_p7 }
  0x1f   : > { %2846 = shalt.err (!%p2843_p1)
}
  0x20   : > { %s2847_s7 = scalar_lea.vmem %s3036_s14, 256  ;;  %s2930_s9 = smov [#allocation2]  }
  0x21   : > { %p2848_p2 = scmp.ne.s32.totalorder %s3036_s14, %s2847_s7  ;;  %s2852_s10 = sshll.u32 %s2930_s9, 4  ;;  %s2853_s10 = int_to_ptr.vmem [resolvable:$false] %s2852_s10 }
  0x22   : > { %s2854_s11 = scalar_lea.vmem %s2853_s10, 512  ;;  %p2855_p11 = scmp.lt.s32.totalorder %s3036_s14, %s2853_s10 }
  0x23   : > { %p2850_p4 = pnand %p2848_p2, %p2834_p3  ;;  %p2856_p5 = scmp.lt.s32.totalorder %s2854_s11, %s2847_s7 }
  0x25   : > { %p2851_p12 = pneg %p2850_p4  ;;  %p2857_p8 = por %p2856_p5, %p2855_p11 }
  0x27   : > { %p2858_p9 = pnand %p2857_p8, %p2851_p12 }
  0x29   : > { %2861 = shalt.err (!%p2858_p9)
}
  0x2a   : > { %2787 = dma.hbm_to_vmem [thread:$0]  (!%p3032_p13), %s3028_s12, 256, %s3036_s14, %s198_s16  }
  0x2b   : > { %p4412_p0 = scmp.lt.s32.totalorder %s2928_s21, 3  ;;  %p4413_p1 = scmp.ge.s32.totalorder %s2928_s21, 1 }
  0x2d   : > { %p215_p3 = pnand %p4413_p1, %p4412_p0 }
  0x2e   : > { %s3070_s13 = sand.u32 (!%p215_p3), 1, %s2920_s19  }
  0x2f   : > { %218 = sbr.rel (%p215_p3) target bundleno = 599 (0x257), region = 40  ;;  %s2594_s17 = sshll.u32 (!%p215_p3), %s3070_s13, 4 }
  0x30   : > { %s221_s23 = scalar_lea.sflag (!%p215_p3), [#allocation3], %s3070_s13  ;;  %s3076_s15 = scalar_lea.vmem (!%p215_p3), [#allocation2], %s2594_s17 }
  0x36   : > { %2907 = dma.done.wait (%p3008_p6), %s221_s23, 256  }
  0x37   : > { %2909 = vsyncadd (%p3008_p6), %s221_s23, 4294967040  ;;  %v2931_v0 = vmov 0   ;;  %v264_v1 = vld [vmem:[%s4402_s2] sm:$0xff]  ;;  %v265_v2 = vld [vmem:[%s4402_s2 + $0x8] sm:$0xff]  ;;  %v2932_v3 = vmov 0.0   ;;  %s2596_s29 = sshll.u32 %s2986_s22, 4  ;;  %v268_v4 = vlaneseq }
  0x38   : > { %2829 = vset.pattern.permute.xlu0 %v2931_v0  ;;  %2830 = vset.pattern.permute.xlu1 %v2931_v0  ;;  %p256_p6 = scmp.lt.s32.totalorder %s2596_s29, 31  ;;  %vm1608_vm11 = vcmask 130048   ;;  %p4414_p12 = scmp.ne.s32.totalorder %s4409_s30, 0 }
  0x39   : > { %350 = vperm.xlu0 %2829, %v264_v1   ;;  %1679 = vmatprep.mubr.f32.mxu0 %v2932_v3  ;;  %v3091_v5 = vshrl.u32 %v268_v4, 7  ;;  %s2934_s7 = smov [#allocation5]  }
  0x3a   : > { %1756 = vmatprep.mubr.f32.mxu1 %v2932_v3  ;;  %s4422_s29 = smov (!%p256_p6, %s2596_s29), 31  ;;  %s2866_s9 = sshll.u32 %s2934_s7, 4  ;;  %s2867_s9 = int_to_ptr.vmem [resolvable:$false] %s2866_s9 }
  0x3b   : > { %s3096_s8 = scalar_lea.vmem %s4400_s0, %s4422_s29  ;;  %v3099_v6 = vsub.s32 1, %v3091_v5  ;;  %v3102_v7 = vsub.s32 3, %v3091_v5  ;;  %v3106_v9 = vsub.s32 0, %v3091_v5  ;;  %v3109_v10 = vsub.s32 2, %v3091_v5  ;;  %s2868_s10 = scalar_lea.vmem %s2867_s9, 512 }
  0x3c   : > { %v262_v8 = vld [vmem:[%s3096_s8] sm:$0xff]  ;;  %v3114_v13 = vsub.s32 5, %v3091_v5  ;;  %v3117_v14 = vsub.s32 7, %v3091_v5  ;;  %v3123_v16 = vsub.s32 4, %v3091_v5  ;;  %v3126_v17 = vsub.s32 6, %v3091_v5  ;;  %v3129_v18 = vld [vmem:[%s3096_s8 + $0x8] sm:$0xff] }
  0x3d   : > { %355 = vperm.xlu0 %2829, %v265_v2   ;;  %v275_v11 = vrot.slane %v262_v8, %v3099_v6  ;;  %v283_v12 = vrot.slane %v262_v8, %v3102_v7  ;;  %v3120_v15 = vrot.slane %v262_v8, %v3106_v9  ;;  %v3134_v20 = vrot.slane %v262_v8, %v3109_v10 }
  0x3e   : > { %v3139_v23 = vrot.slane %v262_v8, %v3114_v13  ;;  %v3142_v24 = vrot.slane %v262_v8, %v3117_v14  ;;  %v3147_v26 = vrot.slane %v262_v8, %v3123_v16  ;;  %v3150_v27 = vrot.slane %v262_v8, %v3126_v17 }
  0x3f   : > { %v3154_v28 = vrot.slane %v3129_v18, %v3099_v6  ;;  %v3158_v31 = vrot.slane %v3129_v18, %v3102_v7  ;;  %v3162_v32 = vrot.slane %v3129_v18, %v3106_v9  ;;  %v3170_v35 = vrot.slane %v3129_v18, %v3109_v10 }
  0x40   : > { %v3174_v36 = vrot.slane %v3129_v18, %v3114_v13  ;;  %v3178_v37 = vrot.slane %v3129_v18, %v3117_v14 }
  0xb8   : > { %v3131_v19 = vpop.permute.xlu0 %350 }
  0xb9   : > { %v359_v21 = vsub.f32 %v275_v11, %v3131_v19  ;;  %v361_v22 = vsub.f32 %v283_v12, %v3131_v19  ;;  %v358_v25 = vsub.f32 %v3120_v15, %v3131_v19  ;;  %v360_v34 = vsub.f32 %v3134_v20, %v3131_v19 }
  0xba   : > { %v363_v43 = vsub.f32 %v3139_v23, %v3131_v19  ;;  %v365_v44 = vsub.f32 %v3142_v24, %v3131_v19  ;;  %v362_v45 = vsub.f32 %v3147_v26, %v3131_v19  ;;  %v364_v49 = vsub.f32 %v3150_v27, %v3131_v19 }
  0xbb   : > { %v391_v29 = vmul.f32 7.5000005, %v359_v21  ;;  %v393_v30 = vmul.f32 7.5000005, %v361_v22  ;;  %v390_v42 = vmul.f32 7.5000005, %v358_v25  ;;  %v367_v53 = vsub.f32 %v3154_v28, %v3131_v19 }
  0xbc   : > { %v3164_v33 = vpop.permute.xlu0 %355  ;;  %v392_v52 = vmul.f32 7.5000005, %v360_v34 }
  0xbd   : > { %v375_v38 = vsub.f32 %v275_v11, %v3164_v33  ;;  %v3181_v39 = vand.u32 2147483647, %v391_v29  ;;  %v377_v40 = vsub.f32 %v283_v12, %v3164_v33  ;;  %v3184_v41 = vand.u32 2147483647, %v393_v30 }
  0xbe   : > { %v374_v57 = vsub.f32 %v3120_v15, %v3164_v33  ;;  %v3205_v60 = vand.u32 2147483647, %v390_v42  ;;  %v376_v61 = vsub.f32 %v3134_v20, %v3164_v33  ;;  %v3218_v11 = vand.u32 2147483647, %v392_v52 }
  0xbf   : > { %v407_v46 = vmul.f32 7.5000005, %v375_v38  ;;  %v455_v47 = vmul.f32 1.5, %v3181_v39  ;;  %v615_v48 = vmul.f32 -0.5, %v3181_v39  ;;  %v409_v50 = vmul.f32 7.5000005, %v377_v40 }
  0xc0   : > { %v457_v51 = vmul.f32 1.5, %v3184_v41  ;;  %v519_v63 = vmul.f32 %v3181_v39, %v3181_v39  ;;  %v617_v1 = vmul.f32 -0.5, %v3184_v41  ;;  %v521_v8 = vmul.f32 %v3184_v41, %v3184_v41 }
  0xc1   : > { %v3199_v54 = vand.u32 2147483647, %v407_v46  ;;  %v2598_v55 = vadd.f32 -2.5, %v455_v47  ;;  %v647_v56 = vadd.f32 2.5, %v615_v48  ;;  %v3203_v58 = vand.u32 2147483647, %v409_v50 }
  0xc2   : > { %v2600_v59 = vadd.f32 -2.5, %v457_v51  ;;  %vm807_vm0 = vcmp.lt.f32.partialorder %v3181_v39, 1.0  ;;  %vm839_vm2 = vcmp.lt.f32.partialorder %v3181_v39, 2.0  ;;  %v649_v40 = vadd.f32 2.5, %v617_v1 }
  0xc3   : > { %v471_v62 = vmul.f32 1.5, %v3199_v54  ;;  %v631_v0 = vmul.f32 -0.5, %v3199_v54  ;;  %v679_v2 = vmul.f32 %v647_v56, %v3181_v39  ;;  %v473_v4 = vmul.f32 1.5, %v3203_v58 }
  0xc4   : > { %v535_v15 = vmul.f32 %v3199_v54, %v3199_v54  ;;  %v551_v21 = vmul.f32 %v2598_v55, %v519_v63  ;;  %v553_v30 = vmul.f32 %v2600_v59, %v521_v8  ;;  %v633_v34 = vmul.f32 -0.5, %v3203_v58 }
  0xc5   : > { %v2614_v12 = vadd.f32 -2.5, %v471_v62  ;;  %v663_v22 = vadd.f32 2.5, %v631_v0  ;;  %v2630_v25 = vadd.f32 -4.0, %v679_v2  ;;  %v2616_v29 = vadd.f32 -2.5, %v473_v4 }
  0xc6   : > { %vm823_vm1 = vcmp.lt.f32.partialorder %v3199_v54, 1.0  ;;  %v537_v47 = vmul.f32 %v3203_v58, %v3203_v58  ;;  %v665_v48 = vadd.f32 2.5, %v633_v34  ;;  %v583_v50 = vadd.f32 1.0, %v551_v21 }
  0xc7   : > { %v695_v38 = vmul.f32 %v663_v22, %v3199_v54  ;;  %v567_v42 = vmul.f32 %v2614_v12, %v535_v15  ;;  %v743_v46 = vmul.f32 %v2630_v25, %v3181_v39  ;;  %vm855_vm3 = vcmp.lt.f32.partialorder %v3199_v54, 2.0 }
  0xc8   : > { %v681_v52 = vmul.f32 %v649_v40, %v3184_v41  ;;  %v569_v56 = vmul.f32 %v2616_v29, %v537_v47  ;;  %v585_v59 = vadd.f32 1.0, %v553_v30  ;;  %v697_v62 = vmul.f32 %v665_v48, %v3203_v58 }
  0xc9   : > { %v2646_v51 = vadd.f32 -4.0, %v695_v38  ;;  %v775_v55 = vadd.f32 2.0, %v743_v46  ;;  %vm809_vm4 = vcmp.lt.f32.partialorder %v3184_v41, 1.0  ;;  %v406_v1 = vmul.f32 7.5000005, %v374_v57 }
  0xca   : > { %v2632_v0 = vadd.f32 -4.0, %v681_v52  ;;  %v454_v2 = vmul.f32 1.5, %v3205_v60  ;;  %v599_v4 = vadd.f32 1.0, %v567_v42  ;;  %v2648_v8 = vadd.f32 -4.0, %v697_v62 }
  0xcb   : > { %v759_v63 = vmul.f32 %v2646_v51, %v3199_v54  ;;  %vm841_vm5 = vcmp.lt.f32.partialorder %v3184_v41, 2.0  ;;  %v614_v12 = vmul.f32 -0.5, %v3205_v60  ;;  %v871_v21 = vsel %vm839_vm2, %v775_v55, 0.0 }
  0xcc   : > { %v745_v22 = vmul.f32 %v2632_v0, %v3184_v41  ;;  %v3241_v25 = vand.u32 2147483647, %v406_v1  ;;  %v601_v29 = vadd.f32 1.0, %v569_v56  ;;  %v761_v30 = vmul.f32 %v2648_v8, %v3203_v58 }
  0xcd   : > { %v791_v15 = vadd.f32 2.0, %v759_v63  ;;  %v2597_v57 = vadd.f32 -2.5, %v454_v2  ;;  %v646_v34 = vadd.f32 2.5, %v614_v12  ;;  %v518_v46 = vmul.f32 %v3205_v60, %v3205_v60 }
  0xce   : > { %v777_v40 = vadd.f32 2.0, %v745_v22  ;;  %v470_v42 = vmul.f32 1.5, %v3241_v25  ;;  %v903_v47 = vsel %vm807_vm0, %v583_v50, %v871_v21  ;;  %v793_v51 = vadd.f32 2.0, %v761_v30 }
  0xcf   : > { %v887_v38 = vsel %vm855_vm3, %v791_v15, 0.0  ;;  %v630_v52 = vmul.f32 -0.5, %v3241_v25  ;;  %vm857_vm6 = vcmp.lt.f32.partialorder %v3203_v58, 2.0  ;;  %v678_v62 = vmul.f32 %v646_v34, %v3205_v60 }
  0xd0   : > { %v919_v48 = vsel %vm823_vm1, %v599_v4, %v887_v38  ;;  %v873_v56 = vsel %vm841_vm5, %v777_v40, 0.0  ;;  %vm825_vm7 = vcmp.lt.f32.partialorder %v3203_v58, 1.0  ;;  %v889_v63 = vsel %vm857_vm6, %v793_v51, 0.0 }
  0xd1   : > { %v2748_v55 = vpack.c.bf16 %v919_v48, %v903_v47  ;;  %v550_v0 = vmul.f32 %v2597_v57, %v518_v46  ;;  %v662_v39 = vadd.f32 2.5, %v630_v52  ;;  %v905_v54 = vsel %vm809_vm4, %v585_v59, %v873_v56 }
  0xd2   : > { %v921_v50 = vsel %vm825_vm7, %v601_v29, %v889_v63  ;;  %v2613_v1 = vadd.f32 -2.5, %v470_v42  ;;  %v2629_v2 = vadd.f32 -4.0, %v678_v62  ;;  %v395_v12 = vmul.f32 7.5000005, %v363_v43 }
  0xd3   : > { %2749 = vmatprep.subr.bf16.mxu0 %v2748_v55  ;;  %v2752_v4 = vpack.c.bf16 %v921_v50, %v905_v54  ;;  %v694_v8 = vmul.f32 %v662_v39, %v3241_v25  ;;  %v3268_v58 = vmul.f32 7.5000005, %v365_v44  ;;  %v534_v15 = vmul.f32 %v3241_v25, %v3241_v25 }
  0xd4   : > { %v742_v41 = vmul.f32 %v2629_v2, %v3205_v60  ;;  %v408_v59 = vmul.f32 7.5000005, %v376_v61  ;;  %v456_v21 = vmul.f32 1.5, %v3218_v11  ;;  %v582_v22 = vadd.f32 1.0, %v550_v0 }
  0xd5   : > { %2753 = vmatprep.subr.bf16.mxu1 %v2752_v4  ;;  %v2645_v29 = vadd.f32 -4.0, %v694_v8  ;;  %vm806_vm8 = vcmp.lt.f32.partialorder %v3205_v60, 1.0  ;;  %v616_v43 = vmul.f32 -0.5, %v3218_v11  ;;  %v566_v44 = vmul.f32 %v2613_v1, %v534_v15  ;;  %v936_v4 = vld [vmem:[%s4403_s3] sm:$0xff] }
  0xd6   : > { %v774_v30 = vadd.f32 2.0, %v742_v41  ;;  %vm822_vm9 = vcmp.lt.f32.partialorder %v3241_v25, 1.0  ;;  %v3280_v57 = vand.u32 2147483647, %v408_v59  ;;  %vm838_vm10 = vcmp.lt.f32.partialorder %v3205_v60, 2.0  ;;  %1022 = vperm.xlu1 %2830, %v936_v4  }
  0xd7   : > { %v758_v34 = vmul.f32 %v2645_v29, %v3241_v25  ;;  %v648_v20 = vadd.f32 2.5, %v616_v43  ;;  %v379_v61 = vsub.f32 %v3139_v23, %v3164_v33  ;;  %vm854_vm12 = vcmp.lt.f32.partialorder %v3241_v25, 2.0 }
  0xd8   : > { %v472_v38 = vmul.f32 1.5, %v3280_v57  ;;  %v2599_v40 = vadd.f32 -2.5, %v456_v21  ;;  %v3288_v42 = vand.u32 2147483647, %v395_v12  ;;  %v870_v47 = vsel %vm838_vm10, %v774_v30, 0.0  ;;  %v937_v21 = vld [vmem:[%s4403_s3 + $0x8] sm:$0xff] }
  0xd9   : > { %v790_v46 = vadd.f32 2.0, %v758_v34  ;;  %v632_v48 = vmul.f32 -0.5, %v3280_v57  ;;  %v680_v51 = vmul.f32 %v648_v20, %v3218_v11  ;;  %v598_v52 = vadd.f32 1.0, %v566_v44  ;;  %v3319_v30 = vld [vmem:[%s4404_s4] sm:$0xff] }
  0xda   : > { %v2615_v55 = vadd.f32 -2.5, %v472_v38  ;;  %v520_v56 = vmul.f32 %v3218_v11, %v3218_v11  ;;  %v536_v23 = vmul.f32 %v3280_v57, %v3280_v57  ;;  %v411_v39 = vmul.f32 7.5000005, %v379_v61  ;;  %1027 = vperm.xlu1 %2830, %v937_v21  }
  0xdb   : > { %v886_v62 = vsel %vm854_vm12, %v790_v46, 0.0  ;;  %v664_v63 = vadd.f32 2.5, %v632_v48  ;;  %v2631_v0 = vadd.f32 -4.0, %v680_v51  ;;  %v902_v54 = vsel %vm806_vm8, %v582_v22, %v870_v47 }
  0xdc   : > { %v918_v50 = vsel %vm822_vm9, %v598_v52, %v886_v62  ;;  %v552_v1 = vmul.f32 %v2599_v40, %v520_v56  ;;  %v459_v2 = vmul.f32 1.5, %v3288_v42  ;;  %v3306_v41 = vand.u32 2147483647, %v411_v39  ;;  %v3337_v62 = vld [vmem:[%s4404_s4 + $0x8] sm:$0xff] }
  0xdd   : > { %v2750_v8 = vpack.c.bf16 %v918_v50, %v902_v54  ;;  %v696_v12 = vmul.f32 %v664_v63, %v3280_v57  ;;  %v744_v15 = vmul.f32 %v2631_v0, %v3218_v11  ;;  %v568_v60 = vmul.f32 %v2615_v55, %v536_v23 }
  0xde   : > { %vm808_vm13 = vcmp.lt.f32.partialorder %v3218_v11, 1.0  ;;  %v2602_v25 = vadd.f32 -2.5, %v459_v2  ;;  %v619_v59 = vmul.f32 -0.5, %v3288_v42  ;;  %v475_v43 = vmul.f32 1.5, %v3306_v41 }
  0xdf   : > { %2751 = vmatpush1.bf16.msra.mxu0 %v2750_v8  ;;  %v2647_v22 = vadd.f32 -4.0, %v696_v12  ;;  %v776_v29 = vadd.f32 2.0, %v744_v15  ;;  %v523_v44 = vmul.f32 %v3288_v42, %v3288_v42  ;;  %v584_v34 = vadd.f32 1.0, %v552_v1 }
  0xe0   : > { %vm840_vm14 = vcmp.lt.f32.partialorder %v3218_v11, 2.0  ;;  %v635_v20 = vmul.f32 -0.5, %v3306_v41  ;;  %v651_v61 = vadd.f32 2.5, %v619_v59  ;;  %vm824_vm15 = vcmp.lt.f32.partialorder %v3280_v57, 1.0 }
  0xe1   : > { %v760_v38 = vmul.f32 %v2647_v22, %v3280_v57  ;;  %vm856_vm0 = vcmp.lt.f32.partialorder %v3280_v57, 2.0  ;;  %v555_v40 = vmul.f32 %v2602_v25, %v523_v44  ;;  %v600_v46 = vadd.f32 1.0, %v568_v60 }
  0xe2   : > { %v872_v47 = vsel %vm840_vm14, %v776_v29, 0.0  ;;  %v667_v48 = vadd.f32 2.5, %v635_v20  ;;  %v683_v51 = vmul.f32 %v651_v61, %v3288_v42  ;;  %2725 = vmatmul.mubr.msk.f32.vlgmr.msra.gmra.mrb[0].mxu0 %vm1608_vm11, %v3319_v30  ;;  %v2618_v55 = vadd.f32 -2.5, %v475_v43 }
  0xe3   : > { %v792_v52 = vadd.f32 2.0, %v760_v38  ;;  %v539_v56 = vmul.f32 %v3306_v41, %v3306_v41  ;;  %v381_v23 = vsub.f32 %v3142_v24, %v3164_v33  ;;  %1685 = vmatprep.mubr.f32.mxu0 %v2932_v3  ;;  %vm843_vm1 = vcmp.lt.f32.partialorder %v3288_v42, 2.0 }
  0xe4   : > { %v699_v63 = vmul.f32 %v667_v48, %v3306_v41  ;;  %v2634_v0 = vadd.f32 -4.0, %v683_v51  ;;  %v3342_v39 = vand.u32 2147483647, %v3268_v58  ;;  %v904_v24 = vsel %vm808_vm13, %v584_v34, %v872_v47 }
  0xe5   : > { %v888_v54 = vsel %vm856_vm0, %v792_v52, 0.0  ;;  %v587_v50 = vadd.f32 1.0, %v555_v40  ;;  %v413_v1 = vmul.f32 7.5000005, %v381_v23  ;;  %v571_v15 = vmul.f32 %v2618_v55, %v539_v56 }
  0xe6   : > { %v920_v2 = vsel %vm824_vm15, %v600_v46, %v888_v54  ;;  %v2650_v4 = vadd.f32 -4.0, %v699_v63  ;;  %v747_v8 = vmul.f32 %v2634_v0, %v3288_v42  ;;  %v461_v12 = vmul.f32 1.5, %v3342_v39  ;;  %2726 = vmatmul.mubr.msk.f32.gmra.mrb[2].mxu0 %vm1608_vm11, %v3337_v62 }
  0xe7   : > { %v2754_v58 = vpack.c.bf16 %v920_v2, %v904_v24  ;;  %v3354_v60 = vand.u32 2147483647, %v413_v1  ;;  %v621_v11 = vmul.f32 -0.5, %v3342_v39  ;;  %1833 = vmatprep.mubr.f32.mxu0 %v2932_v3  ;;  %vm859_vm2 = vcmp.lt.f32.partialorder %v3306_v41, 2.0 }
  0xe8   : > { %v763_v25 = vmul.f32 %v2650_v4, %v3306_v41  ;;  %v779_v57 = vadd.f32 2.0, %v747_v8  ;;  %v2604_v59 = vadd.f32 -2.5, %v461_v12  ;;  %v525_v22 = vmul.f32 %v3342_v39, %v3342_v39 }
  0xe9   : > { %2755 = vmatpush1.bf16.msra.mxu1 %v2754_v58  ;;  %v477_v21 = vmul.f32 1.5, %v3354_v60  ;;  %v637_v29 = vmul.f32 -0.5, %v3354_v60  ;;  %v653_v43 = vadd.f32 2.5, %v621_v11  ;;  %v378_v20 = vsub.f32 %v3147_v26, %v3164_v33 }
  0xea   : > { %v795_v44 = vadd.f32 2.0, %v763_v25  ;;  %v875_v34 = vsel %vm843_vm1, %v779_v57, 0.0  ;;  %v394_v61 = vmul.f32 7.5000005, %v362_v45  ;;  %v603_v38 = vadd.f32 1.0, %v571_v15 }
  0xeb   : > { %v557_v40 = vmul.f32 %v2604_v59, %v525_v22  ;;  %v669_v46 = vadd.f32 2.5, %v637_v29  ;;  %v685_v47 = vmul.f32 %v653_v43, %v3342_v39  ;;  %vm811_vm3 = vcmp.lt.f32.partialorder %v3288_v42, 1.0 }
  0xec   : > { %vm827_vm4 = vcmp.lt.f32.partialorder %v3306_v41, 1.0  ;;  %v891_v48 = vsel %vm859_vm2, %v795_v44, 0.0  ;;  %v2620_v51 = vadd.f32 -2.5, %v477_v21  ;;  %2727 = vmatmul.mubr.msk.f32.vlgmr.msra.gmra.mrb[0].mxu1 %vm1608_vm11, %v3319_v30  ;;  %v907_v52 = vsel %vm811_vm3, %v587_v50, %v875_v34 }
  0xed   : > { %v923_v55 = vsel %vm827_vm4, %v603_v38, %v891_v48  ;;  %v701_v26 = vmul.f32 %v669_v46, %v3354_v60  ;;  %v2636_v45 = vadd.f32 -4.0, %v685_v47  ;;  %vm813_vm5 = vcmp.lt.f32.partialorder %v3342_v39, 1.0  ;;  %1762 = vmatprep.mubr.f32.mxu1 %v2932_v3 }
  0xee   : > { %v2756_v56 = vpack.c.bf16 %v923_v55, %v907_v52  ;;  %v541_v42 = vmul.f32 %v3354_v60, %v3354_v60  ;;  %v410_v23 = vmul.f32 7.5000005, %v378_v20  ;;  %v3383_v41 = vand.u32 2147483647, %v394_v61 }
  0xef   : > { %v589_v63 = vadd.f32 1.0, %v557_v40  ;;  %v2652_v0 = vadd.f32 -4.0, %v701_v26  ;;  %v749_v54 = vmul.f32 %v2636_v45, %v3342_v39  ;;  %vm829_vm6 = vcmp.lt.f32.partialorder %v3354_v60, 1.0 }
  0xf0   : > { %2757 = vmatprep.subr.bf16.mxu0 %v2756_v56  ;;  %v573_v24 = vmul.f32 %v2620_v51, %v541_v42  ;;  %v3387_v50 = vand.u32 2147483647, %v410_v23  ;;  %v458_v1 = vmul.f32 1.5, %v3383_v41  ;;  %v618_v2 = vmul.f32 -0.5, %v3383_v41  ;;  %2728 = vmatmul.mubr.msk.f32.gmra.mrb[2].mxu1 %vm1608_vm11, %v3337_v62 }
  0xf1   : > { %v765_v4 = vmul.f32 %v2652_v0, %v3354_v60  ;;  %v781_v8 = vadd.f32 2.0, %v749_v54  ;;  %vm845_vm7 = vcmp.lt.f32.partialorder %v3342_v39, 2.0  ;;  %v380_v12 = vsub.f32 %v3150_v27, %v3164_v33  ;;  %1910 = vmatprep.mubr.f32.mxu1 %v2932_v3 }
  0xf2   : > { %vm861_vm8 = vcmp.lt.f32.partialorder %v3354_v60, 2.0  ;;  %v474_v58 = vmul.f32 1.5, %v3387_v50  ;;  %v2601_v15 = vadd.f32 -2.5, %v458_v1  ;;  %v634_v11 = vmul.f32 -0.5, %v3387_v50 }
  0xf3   : > { %v797_v25 = vadd.f32 2.0, %v765_v4  ;;  %v877_v57 = vsel %vm845_vm7, %v781_v8, 0.0  ;;  %v650_v59 = vadd.f32 2.5, %v618_v2  ;;  %v396_v21 = vmul.f32 7.5000005, %v364_v49 }
  0xf4   : > { %v605_v22 = vadd.f32 1.0, %v573_v24  ;;  %v522_v29 = vmul.f32 %v3383_v41, %v3383_v41  ;;  %v538_v43 = vmul.f32 %v3387_v50, %v3387_v50  ;;  %v666_v44 = vadd.f32 2.5, %v634_v11 }
  0xf5   : > { %v893_v34 = vsel %vm861_vm8, %v797_v25, 0.0  ;;  %v2617_v20 = vadd.f32 -2.5, %v474_v58  ;;  %v682_v61 = vmul.f32 %v650_v59, %v3383_v41  ;;  %v412_v38 = vmul.f32 7.5000005, %v380_v12 }
  0xf6   : > { %v909_v40 = vsel %vm813_vm5, %v589_v63, %v877_v57  ;;  %v925_v27 = vsel %vm829_vm6, %v605_v22, %v893_v34  ;;  %v554_v49 = vmul.f32 %v2601_v15, %v522_v29  ;;  %v698_v46 = vmul.f32 %v666_v44, %v3387_v50 }
  0xf7   : > { %vm810_vm9 = vcmp.lt.f32.partialorder %v3383_v41, 1.0  ;;  %v2760_v47 = vpack.c.bf16 %v925_v27, %v909_v40  ;;  %v2633_v48 = vadd.f32 -4.0, %v682_v61  ;;  %v3415_v51 = vand.u32 2147483647, %v396_v21 }
  0xf8   : > { %v3417_v52 = vand.u32 2147483647, %v412_v38  ;;  %v2649_v55 = vadd.f32 -4.0, %v698_v46  ;;  %vm826_vm10 = vcmp.lt.f32.partialorder %v3387_v50, 1.0  ;;  %vm842_vm12 = vcmp.lt.f32.partialorder %v3383_v41, 2.0 }
  0xf9   : > { %vm858_vm13 = vcmp.lt.f32.partialorder %v3387_v50, 2.0  ;;  %2761 = vmatprep.subr.bf16.mxu1 %v2760_v47  ;;  %v570_v39 = vmul.f32 %v2617_v20, %v538_v43  ;;  %v746_v60 = vmul.f32 %v2633_v48, %v3383_v41  ;;  %v460_v26 = vmul.f32 1.5, %v3415_v51 }
  0xfa   : > { %v476_v45 = vmul.f32 1.5, %v3417_v52  ;;  %v586_v56 = vadd.f32 1.0, %v554_v49  ;;  %v762_v42 = vmul.f32 %v2649_v55, %v3387_v50  ;;  %v620_v23 = vmul.f32 -0.5, %v3415_v51 }
  0xfb   : > { %v636_v63 = vmul.f32 -0.5, %v3417_v52  ;;  %v778_v0 = vadd.f32 2.0, %v746_v60  ;;  %v2603_v54 = vadd.f32 -2.5, %v460_v26  ;;  %v383_v1 = vsub.f32 %v3154_v28, %v3164_v33 }
  0xfc   : > { %v2619_v24 = vadd.f32 -2.5, %v476_v45  ;;  %v794_v2 = vadd.f32 2.0, %v762_v42  ;;  %v524_v4 = vmul.f32 %v3415_v51, %v3415_v51  ;;  %v652_v8 = vadd.f32 2.5, %v620_v23 }
  0xfd   : > { %v668_v12 = vadd.f32 2.5, %v636_v63  ;;  %v602_v58 = vadd.f32 1.0, %v570_v39  ;;  %v874_v15 = vsel %vm842_vm12, %v778_v0, 0.0  ;;  %v540_v11 = vmul.f32 %v3417_v52, %v3417_v52 }
  0xfe   : > { %v399_v25 = vmul.f32 7.5000005, %v367_v53  ;;  %v890_v57 = vsel %vm858_vm13, %v794_v2, 0.0  ;;  %v556_v59 = vmul.f32 %v2603_v54, %v524_v4  ;;  %v684_v21 = vmul.f32 %v652_v8, %v3415_v51 }
  0xff   : > { %v700_v22 = vmul.f32 %v668_v12, %v3417_v52  ;;  %v906_v29 = vsel %vm810_vm9, %v586_v56, %v874_v15  ;;  %v922_v43 = vsel %vm826_vm10, %v602_v58, %v890_v57  ;;  %v572_v44 = vmul.f32 %v2619_v24, %v540_v11 }
 0x100   : > { %v369_v34 = vsub.f32 %v3158_v31, %v3131_v19  ;;  %v2758_v28 = vpack.c.bf16 %v922_v43, %v906_v29  ;;  %v2635_v53 = vadd.f32 -4.0, %v684_v21  ;;  %v415_v61 = vmul.f32 7.5000005, %v383_v1 }
 0x101   : > { %v2651_v20 = vadd.f32 -4.0, %v700_v22  ;;  %vm812_vm14 = vcmp.lt.f32.partialorder %v3415_v51, 1.0  ;;  %vm828_vm15 = vcmp.lt.f32.partialorder %v3417_v52, 1.0  ;;  %vm844_vm0 = vcmp.lt.f32.partialorder %v3415_v51, 2.0 }
 0x102   : > { %v3452_v38 = vand.u32 2147483647, %v399_v25  ;;  %2759 = vmatpush1.bf16.msra.mxu0 %v2758_v28  ;;  %v588_v41 = vadd.f32 1.0, %v556_v59  ;;  %v748_v50 = vmul.f32 %v2635_v53, %v3415_v51  ;;  %v3456_v27 = vand.u32 2147483647, %v415_v61 }
 0x103   : > { %v764_v40 = vmul.f32 %v2651_v20, %v3417_v52  ;;  %v604_v49 = vadd.f32 1.0, %v572_v44  ;;  %vm860_vm1 = vcmp.lt.f32.partialorder %v3417_v52, 2.0  ;;  %v385_v60 = vsub.f32 %v3158_v31, %v3164_v33 }
 0x104   : > { %v463_v46 = vmul.f32 1.5, %v3452_v38  ;;  %v623_v47 = vmul.f32 -0.5, %v3452_v38  ;;  %v780_v48 = vadd.f32 2.0, %v748_v50  ;;  %v479_v39 = vmul.f32 1.5, %v3456_v27 }
 0x105   : > { %v796_v55 = vadd.f32 2.0, %v764_v40  ;;  %v639_v45 = vmul.f32 -0.5, %v3456_v27  ;;  %v401_v42 = vmul.f32 7.5000005, %v369_v34  ;;  %2729 = vmatmul.mubr.msk.f32.vlgmr.msra.gmra.mrb[4].mxu0 %vm1608_vm11, %v3319_v30  ;;  %v527_v54 = vmul.f32 %v3452_v38, %v3452_v38 }
 0x106   : > { %v2606_v26 = vadd.f32 -2.5, %v463_v46  ;;  %v655_v56 = vadd.f32 2.5, %v623_v47  ;;  %v876_v23 = vsel %vm844_vm0, %v780_v48, 0.0  ;;  %v2622_v0 = vadd.f32 -2.5, %v479_v39  ;;  %1839 = vmatprep.mubr.f32.mxu0 %v2932_v3 }
 0x107   : > { %v892_v63 = vsel %vm860_vm1, %v796_v55, 0.0  ;;  %v908_v31 = vsel %vm812_vm14, %v588_v41, %v876_v23  ;;  %v543_v1 = vmul.f32 %v3456_v27, %v3456_v27  ;;  %v671_v2 = vadd.f32 2.5, %v639_v45 }
 0x108   : > { %v924_v24 = vsel %vm828_vm15, %v604_v49, %v892_v63  ;;  %v559_v8 = vmul.f32 %v2606_v26, %v527_v54  ;;  %v687_v12 = vmul.f32 %v655_v56, %v3452_v38  ;;  %v366_v58 = vsub.f32 %v3162_v32, %v3131_v19 }
 0x109   : > { %v2762_v4 = vpack.c.bf16 %v924_v24, %v908_v31  ;;  %v575_v15 = vmul.f32 %v2622_v0, %v543_v1  ;;  %v703_v11 = vmul.f32 %v671_v2, %v3456_v27  ;;  %v417_v25 = vmul.f32 7.5000005, %v385_v60  ;;  %2730 = vmatmul.mubr.msk.f32.gmra.mrb[6].mxu0 %vm1608_vm11, %v3337_v62 }
 0x10a   : > { %v3482_v51 = vand.u32 2147483647, %v401_v42  ;;  %v2638_v52 = vadd.f32 -4.0, %v687_v12  ;;  %vm815_vm2 = vcmp.lt.f32.partialorder %v3452_v38, 1.0  ;;  %vm831_vm3 = vcmp.lt.f32.partialorder %v3456_v27, 1.0  ;;  %1987 = vmatprep.mubr.f32.mxu0 %v2932_v3 }
 0x10b   : > { %2763 = vmatpush1.bf16.msra.mxu1 %v2762_v4  ;;  %v382_v57 = vsub.f32 %v3162_v32, %v3164_v33  ;;  %v2654_v59 = vadd.f32 -4.0, %v703_v11  ;;  %vm847_vm4 = vcmp.lt.f32.partialorder %v3452_v38, 2.0  ;;  %v3492_v21 = vand.u32 2147483647, %v417_v25 }
 0x10c   : > { %v465_v22 = vmul.f32 1.5, %v3482_v51  ;;  %v751_v29 = vmul.f32 %v2638_v52, %v3452_v38  ;;  %vm863_vm5 = vcmp.lt.f32.partialorder %v3456_v27, 2.0  ;;  %v625_v43 = vmul.f32 -0.5, %v3482_v51 }
 0x10d   : > { %v398_v44 = vmul.f32 7.5000005, %v366_v58  ;;  %v591_v34 = vadd.f32 1.0, %v559_v8  ;;  %v607_v28 = vadd.f32 1.0, %v575_v15  ;;  %v767_v32 = vmul.f32 %v2654_v59, %v3456_v27 }
 0x10e   : > { %v481_v53 = vmul.f32 1.5, %v3492_v21  ;;  %2731 = vmatmul.mubr.msk.f32.vlgmr.msra.gmra.mrb[4].mxu1 %vm1608_vm11, %v3319_v30  ;;  %v783_v20 = vadd.f32 2.0, %v751_v29  ;;  %v641_v61 = vmul.f32 -0.5, %v3492_v21  ;;  %v657_v41 = vadd.f32 2.5, %v625_v43 }
 0x10f   : > { %v414_v50 = vmul.f32 7.5000005, %v382_v57  ;;  %1916 = vmatprep.mubr.f32.mxu1 %v2932_v3  ;;  %v799_v40 = vadd.f32 2.0, %v767_v32  ;;  %v2608_v49 = vadd.f32 -2.5, %v465_v22  ;;  %v529_v47 = vmul.f32 %v3482_v51, %v3482_v51 }
 0x110   : > { %v2624_v46 = vadd.f32 -2.5, %v481_v53  ;;  %v879_v48 = vsel %vm847_vm4, %v783_v20, 0.0  ;;  %v673_v55 = vadd.f32 2.5, %v641_v61  ;;  %v689_v39 = vmul.f32 %v657_v41, %v3482_v51 }
 0x111   : > { %v3509_v60 = vand.u32 2147483647, %v398_v44  ;;  %v895_v26 = vsel %vm863_vm5, %v799_v40, 0.0  ;;  %v911_v45 = vsel %vm815_vm2, %v591_v34, %v879_v48  ;;  %v545_v56 = vmul.f32 %v3492_v21, %v3492_v21 }
 0x112   : > { %vm817_vm6 = vcmp.lt.f32.partialorder %v3482_v51, 1.0  ;;  %2732 = vmatmul.mubr.msk.f32.gmra.mrb[6].mxu1 %vm1608_vm11, %v3337_v62  ;;  %v927_v42 = vsel %vm831_vm3, %v607_v28, %v895_v26  ;;  %v705_v23 = vmul.f32 %v673_v55, %v3492_v21  ;;  %v2640_v63 = vadd.f32 -4.0, %v689_v39 }
 0x113   : > { %v3523_v0 = vand.u32 2147483647, %v414_v50  ;;  %2064 = vmatprep.mubr.f32.mxu1 %v2932_v3  ;;  %v2764_v38 = vpack.c.bf16 %v927_v42, %v911_v45  ;;  %v561_v54 = vmul.f32 %v2608_v49, %v529_v47  ;;  %vm849_vm7 = vcmp.lt.f32.partialorder %v3482_v51, 2.0 }
 0x114   : > { %v462_v31 = vmul.f32 1.5, %v3509_v60  ;;  %v577_v24 = vmul.f32 %v2624_v46, %v545_v56  ;;  %v2656_v1 = vadd.f32 -4.0, %v705_v23  ;;  %v753_v2 = vmul.f32 %v2640_v63, %v3482_v51 }
 0x115   : > { %v478_v27 = vmul.f32 1.5, %v3523_v0  ;;  %2765 = vmatprep.subr.bf16.mxu0 %v2764_v38  ;;  %vm833_vm8 = vcmp.lt.f32.partialorder %v3492_v21, 1.0  ;;  %v622_v8 = vmul.f32 -0.5, %v3509_v60  ;;  %v638_v12 = vmul.f32 -0.5, %v3523_v0 }
 0x116   : > { %v2605_v4 = vadd.f32 -2.5, %v462_v31  ;;  %v769_v58 = vmul.f32 %v2656_v1, %v3492_v21  ;;  %v785_v15 = vadd.f32 2.0, %v753_v2  ;;  %vm865_vm9 = vcmp.lt.f32.partialorder %v3492_v21, 2.0 }
 0x117   : > { %v2621_v11 = vadd.f32 -2.5, %v478_v27  ;;  %v526_v25 = vmul.f32 %v3509_v60, %v3509_v60  ;;  %v542_v52 = vmul.f32 %v3523_v0, %v3523_v0  ;;  %v654_v57 = vadd.f32 2.5, %v622_v8 }
 0x118   : > { %v670_v59 = vadd.f32 2.5, %v638_v12  ;;  %v593_v22 = vadd.f32 1.0, %v561_v54  ;;  %v609_v29 = vadd.f32 1.0, %v577_v24  ;;  %v801_v43 = vadd.f32 2.0, %v769_v58 }
 0x119   : > { %v881_v44 = vsel %vm849_vm7, %v785_v15, 0.0  ;;  %v558_v34 = vmul.f32 %v2605_v4, %v526_v25  ;;  %v574_v28 = vmul.f32 %v2621_v11, %v542_v52  ;;  %v686_v32 = vmul.f32 %v654_v57, %v3509_v60 }
 0x11a   : > { %v702_v53 = vmul.f32 %v670_v59, %v3523_v0  ;;  %vm814_vm10 = vcmp.lt.f32.partialorder %v3509_v60, 1.0  ;;  %vm830_vm12 = vcmp.lt.f32.partialorder %v3523_v0, 1.0  ;;  %v897_v20 = vsel %vm865_vm9, %v801_v43, 0.0 }
 0x11b   : > { %v913_v61 = vsel %vm817_vm6, %v593_v22, %v881_v44  ;;  %v368_v41 = vsub.f32 %v3170_v35, %v3131_v19  ;;  %v384_v50 = vsub.f32 %v3170_v35, %v3164_v33  ;;  %v929_v40 = vsel %vm833_vm8, %v609_v29, %v897_v20 }
 0x11c   : > { %v2637_v49 = vadd.f32 -4.0, %v686_v32  ;;  %v2653_v46 = vadd.f32 -4.0, %v702_v53  ;;  %v371_v47 = vsub.f32 %v3174_v36, %v3131_v19  ;;  %v2768_v48 = vpack.c.bf16 %v929_v40, %v913_v61 }
 0x11d   : > { %v400_v55 = vmul.f32 7.5000005, %v368_v41  ;;  %v416_v39 = vmul.f32 7.5000005, %v384_v50  ;;  %v387_v51 = vsub.f32 %v3174_v36, %v3164_v33  ;;  %vm846_vm13 = vcmp.lt.f32.partialorder %v3509_v60, 2.0 }
 0x11e   : > { %v750_v26 = vmul.f32 %v2637_v49, %v3509_v60  ;;  %v766_v45 = vmul.f32 %v2653_v46, %v3523_v0  ;;  %v403_v35 = vmul.f32 7.5000005, %v371_v47  ;;  %2769 = vmatprep.subr.bf16.mxu1 %v2768_v48  ;;  %v590_v21 = vadd.f32 1.0, %v558_v34 }
 0x11f   : > { %vm862_vm14 = vcmp.lt.f32.partialorder %v3523_v0, 2.0  ;;  %v3563_v56 = vand.u32 2147483647, %v400_v55  ;;  %v3565_v42 = vand.u32 2147483647, %v416_v39  ;;  %v606_v23 = vadd.f32 1.0, %v574_v28 }
 0x120   : > { %v782_v63 = vadd.f32 2.0, %v750_v26  ;;  %v798_v38 = vadd.f32 2.0, %v766_v45  ;;  %v373_v36 = vsub.f32 %v3178_v37, %v3131_v19  ;;  %v419_v24 = vmul.f32 7.5000005, %v387_v51 }
 0x121   : > { %v464_v54 = vmul.f32 1.5, %v3563_v56  ;;  %v480_v31 = vmul.f32 1.5, %v3565_v42  ;;  %v3571_v1 = vand.u32 2147483647, %v403_v35  ;;  %v624_v4 = vmul.f32 -0.5, %v3563_v56 }
 0x122   : > { %v878_v2 = vsel %vm846_vm13, %v782_v63, 0.0  ;;  %v894_v27 = vsel %vm862_vm14, %v798_v38, 0.0  ;;  %v640_v8 = vmul.f32 -0.5, %v3565_v42  ;;  %v528_v59 = vmul.f32 %v3563_v56, %v3563_v56 }
 0x123   : > { %v910_v12 = vsel %vm814_vm10, %v590_v21, %v878_v2  ;;  %v926_v58 = vsel %vm830_vm12, %v606_v23, %v894_v27  ;;  %v2607_v15 = vadd.f32 -2.5, %v464_v54  ;;  %v2623_v11 = vadd.f32 -2.5, %v480_v31 }
 0x124   : > { %v2766_v25 = vpack.c.bf16 %v926_v58, %v910_v12  ;;  %v656_v52 = vadd.f32 2.5, %v624_v4  ;;  %v672_v57 = vadd.f32 2.5, %v640_v8  ;;  %v544_v22 = vmul.f32 %v3565_v42, %v3565_v42 }
 0x125   : > { %v3585_v29 = vrot.slane %v3129_v18, %v3123_v16  ;;  %v3589_v43 = vand.u32 2147483647, %v419_v24  ;;  %v389_v44 = vsub.f32 %v3178_v37, %v3164_v33  ;;  %v560_v34 = vmul.f32 %v2607_v15, %v528_v59 }
 0x126   : > { %2767 = vmatpush1.bf16.msra.mxu0 %v2766_v25  ;;  %v688_v60 = vmul.f32 %v656_v52, %v3563_v56  ;;  %v704_v0 = vmul.f32 %v672_v57, %v3565_v42  ;;  %v576_v28 = vmul.f32 %v2623_v11, %v544_v22  ;;  %v467_v32 = vmul.f32 1.5, %v3571_v1 }
 0x127   : > { %v405_v53 = vmul.f32 7.5000005, %v373_v36  ;;  %vm816_vm15 = vcmp.lt.f32.partialorder %v3563_v56, 1.0  ;;  %v483_v18 = vmul.f32 1.5, %v3589_v43  ;;  %vm832_vm0 = vcmp.lt.f32.partialorder %v3565_v42, 1.0 }
 0x128   : > { %v2639_v20 = vadd.f32 -4.0, %v688_v60  ;;  %v2655_v61 = vadd.f32 -4.0, %v704_v0  ;;  %vm848_vm1 = vcmp.lt.f32.partialorder %v3563_v56, 2.0  ;;  %v627_v41 = vmul.f32 -0.5, %v3571_v1 }
 0x129   : > { %v643_v50 = vmul.f32 -0.5, %v3589_v43  ;;  %2733 = vmatmul.mubr.msk.f32.vlgmr.msra.gmra.mrb[8].mxu0 %vm1608_vm11, %v3319_v30  ;;  %vm864_vm2 = vcmp.lt.f32.partialorder %v3565_v42, 2.0  ;;  %v2610_v49 = vadd.f32 -2.5, %v467_v32  ;;  %v592_v46 = vadd.f32 1.0, %v560_v34 }
 0x12a   : > { %v752_v37 = vmul.f32 %v2639_v20, %v3563_v56  ;;  %v768_v40 = vmul.f32 %v2655_v61, %v3565_v42  ;;  %1993 = vmatprep.mubr.f32.mxu0 %v2932_v3  ;;  %v608_v47 = vadd.f32 1.0, %v576_v28  ;;  %v659_v48 = vadd.f32 2.5, %v627_v41 }
 0x12b   : > { %v675_v55 = vadd.f32 2.5, %v643_v50  ;;  %v2626_v26 = vadd.f32 -2.5, %v483_v18  ;;  %v531_v45 = vmul.f32 %v3571_v1, %v3571_v1  ;;  %v547_v35 = vmul.f32 %v3589_v43, %v3589_v43 }
 0x12c   : > { %v784_v39 = vadd.f32 2.0, %v752_v37  ;;  %v800_v51 = vadd.f32 2.0, %v768_v40  ;;  %v691_v21 = vmul.f32 %v659_v48, %v3571_v1  ;;  %v421_v63 = vmul.f32 7.5000005, %v389_v44 }
 0x12d   : > { %v707_v23 = vmul.f32 %v675_v55, %v3589_v43  ;;  %2734 = vmatmul.mubr.msk.f32.gmra.mrb[10].mxu0 %vm1608_vm11, %v3337_v62  ;;  %v563_v54 = vmul.f32 %v2610_v49, %v531_v45  ;;  %v3618_v31 = vand.u32 2147483647, %v405_v53  ;;  %v579_v12 = vmul.f32 %v2626_v26, %v547_v35 }
 0x12e   : > { %v880_v38 = vsel %vm848_vm1, %v784_v39, 0.0  ;;  %v896_v36 = vsel %vm864_vm2, %v800_v51, 0.0  ;;  %2141 = vmatprep.mubr.f32.mxu0 %v2932_v3  ;;  %v2642_v27 = vadd.f32 -4.0, %v691_v21  ;;  %v3625_v58 = vand.u32 2147483647, %v421_v63 }
 0x12f   : > { %v912_v24 = vsel %vm816_vm15, %v592_v46, %v880_v38  ;;  %v928_v2 = vsel %vm832_vm0, %v608_v47, %v896_v36  ;;  %v2658_v4 = vadd.f32 -4.0, %v707_v23  ;;  %v469_v15 = vmul.f32 1.5, %v3618_v31  ;;  %v2831_v47 = vld [vmem:[%s3096_s8 + $0x8] sm:$0xff] }
 0x130   : > { %v2770_v8 = vpack.c.bf16 %v928_v2, %v912_v24  ;;  %v755_v11 = vmul.f32 %v2642_v27, %v3571_v1  ;;  %vm819_vm3 = vcmp.lt.f32.partialorder %v3571_v1, 1.0  ;;  %v629_v56 = vmul.f32 -0.5, %v3618_v31 }
 0x131   : > { %v771_v25 = vmul.f32 %v2658_v4, %v3589_v43  ;;  %vm835_vm4 = vcmp.lt.f32.partialorder %v3589_v43, 1.0  ;;  %vm851_vm5 = vcmp.lt.f32.partialorder %v3571_v1, 2.0  ;;  %v485_v42 = vmul.f32 1.5, %v3625_v58 }
 0x132   : > { %2771 = vmatpush1.bf16.msra.mxu1 %v2770_v8  ;;  %v645_v52 = vmul.f32 -0.5, %v3625_v58  ;;  %v787_v57 = vadd.f32 2.0, %v755_v11  ;;  %vm867_vm6 = vcmp.lt.f32.partialorder %v3589_v43, 2.0  ;;  %v661_v22 = vadd.f32 2.5, %v629_v56 }
 0x133   : > { %v803_v59 = vadd.f32 2.0, %v771_v25  ;;  %v595_v60 = vadd.f32 1.0, %v563_v54  ;;  %v611_v0 = vadd.f32 1.0, %v579_v12  ;;  %v2612_v44 = vadd.f32 -2.5, %v469_v15 }
 0x134   : > { %v677_v34 = vadd.f32 2.5, %v645_v52  ;;  %v883_v28 = vsel %vm851_vm5, %v787_v57, 0.0  ;;  %v2628_v53 = vadd.f32 -2.5, %v485_v42  ;;  %v693_v20 = vmul.f32 %v661_v22, %v3618_v31 }
 0x135   : > { %v899_v32 = vsel %vm867_vm6, %v803_v59, 0.0  ;;  %2735 = vmatmul.mubr.msk.f32.vlgmr.msra.gmra.mrb[8].mxu1 %vm1608_vm11, %v3319_v30  ;;  %v915_v61 = vsel %vm819_vm3, %v595_v60, %v883_v28  ;;  %v533_v41 = vmul.f32 %v3618_v31, %v3618_v31  ;;  %v549_v50 = vmul.f32 %v3625_v58, %v3625_v58 }
 0x136   : > { %v931_v18 = vsel %vm835_vm4, %v611_v0, %v899_v32  ;;  %2070 = vmatprep.mubr.f32.mxu1 %v2932_v3  ;;  %v709_v40 = vmul.f32 %v677_v34, %v3625_v58  ;;  %v2644_v49 = vadd.f32 -4.0, %v693_v20  ;;  %v370_v46 = vsub.f32 %v3585_v29, %v3131_v19 }
 0x137   : > { %v2772_v37 = vpack.c.bf16 %v931_v18, %v915_v61  ;;  %v565_v1 = vmul.f32 %v2612_v44, %v533_v41  ;;  %v386_v43 = vsub.f32 %v3585_v29, %v3164_v33  ;;  %v327_v48 = vrot.slane %v2831_v47, %v3126_v17 }
 0x138   : > { %v581_v55 = vmul.f32 %v2628_v53, %v549_v50  ;;  %v2660_v39 = vadd.f32 -4.0, %v709_v40  ;;  %v757_v51 = vmul.f32 %v2644_v49, %v3618_v31  ;;  %v402_v26 = vmul.f32 7.5000005, %v370_v46 }
 0x139   : > { %2773 = vmatprep.subr.bf16.mxu0 %v2772_v37  ;;  %2736 = vmatmul.mubr.msk.f32.gmra.mrb[10].mxu1 %vm1608_vm11, %v3337_v62  ;;  %v418_v45 = vmul.f32 7.5000005, %v386_v43  ;;  %v372_v35 = vsub.f32 %v327_v48, %v3131_v19  ;;  %v388_v63 = vsub.f32 %v327_v48, %v3164_v33  ;;  %vm821_vm7 = vcmp.lt.f32.partialorder %v3618_v31, 1.0 }
 0x13a   : > { %2218 = vmatprep.mubr.f32.mxu1 %v2932_v3  ;;  %v773_v21 = vmul.f32 %v2660_v39, %v3625_v58  ;;  %v789_v29 = vadd.f32 2.0, %v757_v51  ;;  %v3662_v23 = vand.u32 2147483647, %v402_v26  ;;  %vm853_vm8 = vcmp.lt.f32.partialorder %v3618_v31, 2.0 }
 0x13b   : > { %vm869_vm9 = vcmp.lt.f32.partialorder %v3625_v58, 2.0  ;;  %v450_v38 = vand.u32 2147483647, %v418_v45  ;;  %v597_v36 = vadd.f32 1.0, %v565_v1  ;;  %v613_v54 = vadd.f32 1.0, %v581_v55 }
 0x13c   : > { %v805_v24 = vadd.f32 2.0, %v773_v21  ;;  %v885_v19 = vsel %vm853_vm8, %v789_v29, 0.0  ;;  %v466_v2 = vmul.f32 1.5, %v3662_v23  ;;  %v626_v4 = vmul.f32 -0.5, %v3662_v23 }
 0x13d   : > { %v482_v27 = vmul.f32 1.5, %v450_v38  ;;  %v404_v8 = vmul.f32 7.5000005, %v372_v35  ;;  %vm837_vm10 = vcmp.lt.f32.partialorder %v3625_v58, 1.0  ;;  %v642_v12 = vmul.f32 -0.5, %v450_v38 }
 0x13e   : > { %v901_v33 = vsel %vm869_vm9, %v805_v24, 0.0  ;;  %v420_v15 = vmul.f32 7.5000005, %v388_v63  ;;  %v917_v11 = vsel %vm821_vm7, %v597_v36, %v885_v19  ;;  %v658_v56 = vadd.f32 2.5, %v626_v4 }
 0x13f   : > { %v933_v25 = vsel %vm837_vm10, %v613_v54, %v901_v33  ;;  %v674_v52 = vadd.f32 2.5, %v642_v12  ;;  %v2609_v57 = vadd.f32 -2.5, %v466_v2  ;;  %v2625_v59 = vadd.f32 -2.5, %v482_v27 }
 0x140   : > { %v2776_v42 = vpack.c.bf16 %v933_v25, %v917_v11  ;;  %v690_v22 = vmul.f32 %v658_v56, %v3662_v23  ;;  %v436_v60 = vand.u32 2147483647, %v404_v8  ;;  %v452_v44 = vand.u32 2147483647, %v420_v15 }
 0x141   : > { %v706_v0 = vmul.f32 %v674_v52, %v450_v38  ;;  %v530_v58 = vmul.f32 %v3662_v23, %v3662_v23  ;;  %v546_v34 = vmul.f32 %v450_v38, %v450_v38  ;;  %vm818_vm12 = vcmp.lt.f32.partialorder %v3662_v23, 1.0 }
 0x142   : > { %2777 = vmatprep.subr.bf16.mxu1 %v2776_v42  ;;  %v2641_v28 = vadd.f32 -4.0, %v690_v22  ;;  %v468_v31 = vmul.f32 1.5, %v436_v60  ;;  %v484_v53 = vmul.f32 1.5, %v452_v44  ;;  %v628_v20 = vmul.f32 -0.5, %v436_v60  ;;  %v3693_v42 = vld [vmem:[%s3076_s15] sm:$0xff] }
 0x143   : > { %v2657_v32 = vadd.f32 -4.0, %v706_v0  ;;  %v562_v61 = vmul.f32 %v2609_v57, %v530_v58  ;;  %v578_v18 = vmul.f32 %v2625_v59, %v546_v34  ;;  %v644_v50 = vmul.f32 -0.5, %v452_v44 }
 0x144   : > { %v754_v41 = vmul.f32 %v2641_v28, %v3662_v23  ;;  %vm834_vm13 = vcmp.lt.f32.partialorder %v450_v38, 1.0  ;;  %v660_v40 = vadd.f32 2.5, %v628_v20  ;;  %vm850_vm14 = vcmp.lt.f32.partialorder %v3662_v23, 2.0 }
 0x145   : > { %v770_v37 = vmul.f32 %v2657_v32, %v450_v38  ;;  %vm866_vm15 = vcmp.lt.f32.partialorder %v450_v38, 2.0  ;;  %v676_v46 = vadd.f32 2.5, %v644_v50  ;;  %v2611_v43 = vadd.f32 -2.5, %v468_v31 }
 0x146   : > { %v786_v49 = vadd.f32 2.0, %v754_v41  ;;  %v2627_v47 = vadd.f32 -2.5, %v484_v53  ;;  %v692_v48 = vmul.f32 %v660_v40, %v436_v60  ;;  %v594_v55 = vadd.f32 1.0, %v562_v61 }
 0x147   : > { %v802_v1 = vadd.f32 2.0, %v770_v37  ;;  %v610_v39 = vadd.f32 1.0, %v578_v18  ;;  %v708_v26 = vmul.f32 %v676_v46, %v452_v44  ;;  %v532_v35 = vmul.f32 %v436_v60, %v436_v60 }
 0x148   : > { %v882_v51 = vsel %vm850_vm14, %v786_v49, 0.0  ;;  %v548_v21 = vmul.f32 %v452_v44, %v452_v44  ;;  %v2643_v29 = vadd.f32 -4.0, %v692_v48  ;;  %vm852_vm0 = vcmp.lt.f32.partialorder %v436_v60, 2.0 }
 0x149   : > { %v898_v45 = vsel %vm866_vm15, %v802_v1, 0.0  ;;  %v914_v63 = vsel %vm818_vm12, %v594_v55, %v882_v51  ;;  %v2659_v54 = vadd.f32 -4.0, %v708_v26  ;;  %v564_v19 = vmul.f32 %v2611_v43, %v532_v35 }
 0x14a   : > { %v930_v36 = vsel %vm834_vm13, %v610_v39, %v898_v45  ;;  %v580_v2 = vmul.f32 %v2627_v47, %v548_v21  ;;  %v756_v27 = vmul.f32 %v2643_v29, %v436_v60  ;;  %vm868_vm1 = vcmp.lt.f32.partialorder %v452_v44, 2.0 }
 0x14b   : > { %v2774_v24 = vpack.c.bf16 %v930_v36, %v914_v63  ;;  %v772_v4 = vmul.f32 %v2659_v54, %v452_v44  ;;  %v596_v12 = vadd.f32 1.0, %v564_v19  ;;  %vm820_vm2 = vcmp.lt.f32.partialorder %v436_v60, 1.0 }
 0x14c   : > { %v788_v8 = vadd.f32 2.0, %v756_v27  ;;  %v612_v15 = vadd.f32 1.0, %v580_v2  ;;  %vm836_vm3 = vcmp.lt.f32.partialorder %v452_v44, 1.0  ;;  %v943_v52 = vrot.slane %v3693_v42, %v3106_v9 }
 0x14d   : > { %2775 = vmatpush1.bf16.msra.mxu0 %v2774_v24  ;;  %v804_v33 = vadd.f32 2.0, %v772_v4  ;;  %v951_v59 = vrot.slane %v3693_v42, %v3109_v10  ;;  %v955_v58 = vrot.slane %v3693_v42, %v3102_v7  ;;  %v2933_v37 = vmov 1966171168  }
 0x14e   : > { %v884_v11 = vsel %vm852_vm0, %v788_v8, 0.0  ;;  %v2396_v40 = vunpack.c.l.s4 %v2933_v37  ;;  %v3722_v49 = vrot.slane %v3693_v42, %v3123_v16  ;;  %v3727_v43 = vrot.slane %v3693_v42, %v3126_v17 }
 0x14f   : > { %v900_v23 = vsel %vm868_vm1, %v804_v33, 0.0  ;;  %v916_v38 = vsel %vm820_vm2, %v596_v12, %v884_v11 }
 0x150   : > { %2737 = vmatmul.mubr.msk.f32.vlgmr.msra.gmra.mrb[12].mxu0 %vm1608_vm11, %v3319_v30  ;;  %v932_v25 = vsel %vm836_vm3, %v612_v15, %v900_v23  ;;  %v2397_v39 = vunpack.c.0.s8 %v2396_v40 }
 0x151   : > { %2147 = vmatprep.mubr.f32.mxu0 %v2932_v3  ;;  %v2778_v56 = vpack.c.bf16 %v932_v25, %v916_v38 }
 0x152   : > { %v3743_v24 = vsub.s32 %v2397_v39, %v3091_v5 }
 0x153   : > { %2779 = vmatpush1.bf16.msra.mxu1 %v2778_v56 }
 0x154   : > { %2738 = vmatmul.mubr.msk.f32.gmra.mrb[14].mxu0 %vm1608_vm11, %v3337_v62 }
 0x155   : > { %v3697_v57 = vpop.permute.xlu1 %1022 }
 0x156   : > { %2739 = vmatmul.mubr.msk.f32.vlgmr.msra.gmra.mrb[12].mxu1 %vm1608_vm11, %v3319_v30  ;;  %v1030_v22 = vsub.f32 %v943_v52, %v3697_v57  ;;  %v1032_v60 = vsub.f32 %v951_v59, %v3697_v57  ;;  %v1033_v31 = vsub.f32 %v955_v58, %v3697_v57  ;;  %v1034_v26 = vsub.f32 %v3722_v49, %v3697_v57 }
 0x157   : > { %2224 = vmatprep.mubr.f32.mxu1 %v2932_v3  ;;  %v947_v3 = vrot.slane %v3693_v42, %v3099_v6  ;;  %v1036_v21 = vsub.f32 %v3727_v43, %v3697_v57 }
 0x158   : > { %v1062_v30 = vmul.f32 7.5000005, %v1030_v22  ;;  %v1064_v0 = vmul.f32 7.5000005, %v1032_v60  ;;  %v1065_v41 = vmul.f32 7.5000005, %v1033_v31 }
 0x159   : > { %v3714_v53 = vpop.permute.xlu1 %1027  ;;  %v1066_v4 = vmul.f32 7.5000005, %v1034_v26  ;;  %v1068_v15 = vmul.f32 7.5000005, %v1036_v21 }
 0x15a   : > { %2740 = vmatmul.mubr.msk.f32.gmra.mrb[14].mxu1 %vm1608_vm11, %v3337_v62  ;;  %v1031_v62 = vsub.f32 %v947_v3, %v3697_v57  ;;  %v3706_v44 = vand.u32 2147483647, %v1062_v30  ;;  %v3710_v34 = vand.u32 2147483647, %v1064_v0  ;;  %v1046_v50 = vsub.f32 %v943_v52, %v3714_v53 }
 0x15b   : > { %v3730_v48 = vand.u32 2147483647, %v1065_v41  ;;  %v1048_v51 = vsub.f32 %v951_v59, %v3714_v53  ;;  %v1047_v12 = vsub.f32 %v947_v3, %v3714_v53  ;;  %v1049_v5 = vsub.f32 %v955_v58, %v3714_v53 }
 0x15c   : > { %v1063_v28 = vmul.f32 7.5000005, %v1031_v62  ;;  %v1286_v32 = vmul.f32 -0.5, %v3706_v44  ;;  %v1288_v20 = vmul.f32 -0.5, %v3710_v34  ;;  %v1078_v55 = vmul.f32 7.5000005, %v1046_v50 }
 0x15d   : > { %v1126_v29 = vmul.f32 1.5, %v3706_v44  ;;  %v1289_v36 = vmul.f32 -0.5, %v3730_v48  ;;  %v1128_v19 = vmul.f32 1.5, %v3710_v34  ;;  %v1080_v27 = vmul.f32 7.5000005, %v1048_v51 }
 0x15e   : > { %v3717_v61 = vand.u32 2147483647, %v1063_v28  ;;  %v1318_v18 = vadd.f32 2.5, %v1286_v32  ;;  %v1320_v46 = vadd.f32 2.5, %v1288_v20  ;;  %v3740_v54 = vand.u32 2147483647, %v1078_v55 }
 0x15f   : > { %v2661_v11 = vadd.f32 -2.5, %v1126_v29  ;;  %v1190_v23 = vmul.f32 %v3706_v44, %v3706_v44  ;;  %v1129_v38 = vmul.f32 1.5, %v3730_v48  ;;  %v1192_v56 = vmul.f32 %v3710_v34, %v3710_v34 }
 0x160   : > { %v1287_v1 = vmul.f32 -0.5, %v3717_v61  ;;  %v1350_v47 = vmul.f32 %v1318_v18, %v3706_v44  ;;  %v1352_v45 = vmul.f32 %v1320_v46, %v3710_v34  ;;  %v1127_v2 = vmul.f32 1.5, %v3717_v61 }
 0x161   : > { %v1321_v52 = vadd.f32 2.5, %v1289_v36  ;;  %v1302_v59 = vmul.f32 -0.5, %v3740_v54  ;;  %v2663_v22 = vadd.f32 -2.5, %v1128_v19  ;;  %v1191_v3 = vmul.f32 %v3717_v61, %v3717_v61 }
 0x162   : > { %v1319_v35 = vadd.f32 2.5, %v1287_v1  ;;  %v2693_v63 = vadd.f32 -4.0, %v1350_v47  ;;  %v2695_v8 = vadd.f32 -4.0, %v1352_v45  ;;  %v2662_v60 = vadd.f32 -2.5, %v1127_v2 }
 0x163   : > { %v3759_v30 = vand.u32 2147483647, %v1080_v27  ;;  %vm1478_vm11 = vcmp.lt.f32.partialorder %v3706_v44, 1.0  ;;  %v1079_v58 = vmul.f32 7.5000005, %v1047_v12  ;;  %v1222_v28 = vmul.f32 %v2661_v11, %v1190_v23 }
 0x164   : > { %v1351_v33 = vmul.f32 %v1319_v35, %v3717_v61  ;;  %v1414_v25 = vmul.f32 %v2693_v63, %v3706_v44  ;;  %v1416_v0 = vmul.f32 %v2695_v8, %v3710_v34  ;;  %vm1510_vm4 = vcmp.lt.f32.partialorder %v3706_v44, 2.0 }
 0x165   : > { %v2664_v32 = vadd.f32 -2.5, %v1129_v38  ;;  %v1193_v31 = vmul.f32 %v3730_v48, %v3730_v48  ;;  %v1353_v18 = vmul.f32 %v1321_v52, %v3730_v48  ;;  %v1334_v41 = vadd.f32 2.5, %v1302_v59 }
 0x166   : > { %v2694_v62 = vadd.f32 -4.0, %v1351_v33  ;;  %v1446_v20 = vadd.f32 2.0, %v1414_v25  ;;  %v1081_v50 = vmul.f32 7.5000005, %v1049_v5  ;;  %v1224_v37 = vmul.f32 %v2663_v22, %v1192_v56 }
 0x167   : > { %vm1480_vm5 = vcmp.lt.f32.partialorder %v3710_v34, 1.0  ;;  %v1223_v40 = vmul.f32 %v2662_v60, %v1191_v3  ;;  %v1304_v46 = vmul.f32 -0.5, %v3759_v30  ;;  %v1448_v1 = vadd.f32 2.0, %v1416_v0 }
 0x168   : > { %vm1512_vm6 = vcmp.lt.f32.partialorder %v3710_v34, 2.0  ;;  %v1415_v47 = vmul.f32 %v2694_v62, %v3717_v61  ;;  %v3771_v55 = vand.u32 2147483647, %v1079_v58  ;;  %v1254_v39 = vadd.f32 1.0, %v1222_v28 }
 0x169   : > { %vm1479_vm7 = vcmp.lt.f32.partialorder %v3717_v61, 1.0  ;;  %vm1511_vm8 = vcmp.lt.f32.partialorder %v3717_v61, 2.0  ;;  %v1225_v51 = vmul.f32 %v2664_v32, %v1193_v31  ;;  %v1542_v26 = vsel %vm1510_vm4, %v1446_v20, 0.0 }
 0x16a   : > { %v2696_v45 = vadd.f32 -4.0, %v1353_v18  ;;  %v1366_v35 = vmul.f32 %v1334_v41, %v3740_v54  ;;  %v3778_v21 = vand.u32 2147483647, %v1081_v50  ;;  %v1256_v29 = vadd.f32 1.0, %v1224_v37 }
 0x16b   : > { %v1255_v63 = vadd.f32 1.0, %v1223_v40  ;;  %v1336_v36 = vadd.f32 2.5, %v1304_v46  ;;  %v3782_v19 = vrot.slane %v3693_v42, %v3114_v13  ;;  %v1544_v2 = vsel %vm1512_vm6, %v1448_v1, 0.0 }
 0x16c   : > { %v1447_v27 = vadd.f32 2.0, %v1415_v47  ;;  %vm1513_vm9 = vcmp.lt.f32.partialorder %v3730_v48, 2.0  ;;  %v1303_v8 = vmul.f32 -0.5, %v3771_v55  ;;  %v3788_v33 = vsel %vm1478_vm11, %v1254_v39, %v1542_v26 }
 0x16d   : > { %v1257_v12 = vadd.f32 1.0, %v1225_v51  ;;  %v1142_v11 = vmul.f32 1.5, %v3740_v54  ;;  %v3791_v23 = vand.u32 2147483647, %v1066_v4  ;;  %v1417_v38 = vmul.f32 %v2696_v45, %v3730_v48 }
 0x16e   : > { %vm1481_vm10 = vcmp.lt.f32.partialorder %v3730_v48, 1.0  ;;  %v2709_v5 = vadd.f32 -4.0, %v1366_v35  ;;  %v1144_v25 = vmul.f32 1.5, %v3759_v30  ;;  %v1305_v56 = vmul.f32 -0.5, %v3778_v21 }
 0x16f   : > { %v3799_v52 = vsel %vm1480_vm5, %v1256_v29, %v1544_v2  ;;  %v1368_v44 = vmul.f32 %v1336_v36, %v3759_v30  ;;  %v3802_v59 = vand.u32 2147483647, %v1068_v15  ;;  %v1035_v4 = vsub.f32 %v3782_v19, %v3697_v57 }
 0x170   : > { %v1543_v22 = vsel %vm1511_vm8, %v1447_v27, 0.0  ;;  %v1206_v60 = vmul.f32 %v3740_v54, %v3740_v54  ;;  %v1335_v3 = vadd.f32 2.5, %v1303_v8  ;;  %v3812_v0 = vrot.slane %v3693_v42, %v3117_v14 }
 0x171   : > { %v2677_v34 = vadd.f32 -2.5, %v1142_v11  ;;  %v1208_v62 = vmul.f32 %v3759_v30, %v3759_v30  ;;  %v1143_v15 = vmul.f32 1.5, %v3771_v55  ;;  %v1290_v58 = vmul.f32 -0.5, %v3791_v23 }
 0x172   : > { %v1449_v28 = vadd.f32 2.0, %v1417_v38  ;;  %v1430_v32 = vmul.f32 %v2709_v5, %v3740_v54  ;;  %v2679_v31 = vadd.f32 -2.5, %v1144_v25  ;;  %v1337_v20 = vadd.f32 2.5, %v1305_v56 }
 0x173   : > { %vm1494_vm12 = vcmp.lt.f32.partialorder %v3740_v54, 1.0  ;;  %vm1526_vm13 = vcmp.lt.f32.partialorder %v3740_v54, 2.0  ;;  %v2711_v18 = vadd.f32 -4.0, %v1368_v44  ;;  %v1292_v42 = vmul.f32 -0.5, %v3802_v59 }
 0x174   : > { %v1067_v41 = vmul.f32 7.5000005, %v1035_v4  ;;  %v3824_v50 = vsel %vm1479_vm7, %v1255_v63, %v1543_v22  ;;  %v1367_v37 = vmul.f32 %v1335_v3, %v3771_v55  ;;  %v1037_v40 = vsub.f32 %v3812_v0, %v3697_v57 }
 0x175   : > { %v1050_v46 = vsub.f32 %v3722_v49, %v3714_v53  ;;  %v1238_v1 = vmul.f32 %v2677_v34, %v1206_v60  ;;  %v2678_v47 = vadd.f32 -2.5, %v1143_v15  ;;  %v1207_v39 = vmul.f32 %v3771_v55, %v3771_v55 }
 0x176   : > { %v1322_v51 = vadd.f32 2.5, %v1290_v58  ;;  %v1545_v26 = vsel %vm1513_vm9, %v1449_v28, 0.0  ;;  %v1462_v61 = vadd.f32 2.0, %v1430_v32  ;;  %v1240_v45 = vmul.f32 %v2679_v31, %v1208_v62 }
 0x177   : > { %v1369_v35 = vmul.f32 %v1337_v20, %v3778_v21  ;;  %v1432_v29 = vmul.f32 %v2711_v18, %v3759_v30  ;;  %vm1496_vm14 = vcmp.lt.f32.partialorder %v3759_v30, 1.0  ;;  %v1145_v63 = vmul.f32 1.5, %v3778_v21 }
 0x178   : > { %v1324_v49 = vadd.f32 2.5, %v1292_v42  ;;  %v3839_v36 = vand.u32 2147483647, %v1067_v41  ;;  %vm1528_vm15 = vcmp.lt.f32.partialorder %v3759_v30, 2.0  ;;  %v2710_v2 = vadd.f32 -4.0, %v1367_v37 }
 0x179   : > { %v1069_v27 = vmul.f32 7.5000005, %v1037_v40  ;;  %v1082_v8 = vmul.f32 7.5000005, %v1050_v46  ;;  %v3844_v11 = vsel %vm1481_vm10, %v1257_v12, %v1545_v26  ;;  %v1270_v38 = vadd.f32 1.0, %v1238_v1 }
 0x17a   : > { %v1239_v5 = vmul.f32 %v2678_v47, %v1207_v39  ;;  %v1354_v25 = vmul.f32 %v1322_v51, %v3791_v23  ;;  %v1558_v56 = vsel %vm1526_vm13, %v1462_v61, 0.0  ;;  %v1272_v44 = vadd.f32 1.0, %v1240_v45 }
 0x17b   : > { %v1209_v4 = vmul.f32 %v3778_v21, %v3778_v21  ;;  %v2712_v22 = vadd.f32 -4.0, %v1369_v35  ;;  %v1464_v60 = vadd.f32 2.0, %v1432_v29  ;;  %v2680_v3 = vadd.f32 -2.5, %v1145_v63 }
 0x17c   : > { %v1356_v34 = vmul.f32 %v1324_v49, %v3802_v59  ;;  %v1291_v48 = vmul.f32 -0.5, %v3839_v36  ;;  %v1431_v12 = vmul.f32 %v2710_v2, %v3771_v55  ;;  %vm1495_vm0 = vcmp.lt.f32.partialorder %v3771_v55, 1.0 }
 0x17d   : > { %v1130_v62 = vmul.f32 1.5, %v3791_v23  ;;  %v3856_v15 = vand.u32 2147483647, %v1069_v27  ;;  %v3858_v58 = vand.u32 2147483647, %v1082_v8  ;;  %v1271_v28 = vadd.f32 1.0, %v1239_v5 }
 0x17e   : > { %vm1527_vm1 = vcmp.lt.f32.partialorder %v3771_v55, 2.0  ;;  %v2697_v32 = vadd.f32 -4.0, %v1354_v25  ;;  %v1132_v31 = vmul.f32 1.5, %v3802_v59  ;;  %v3864_v20 = vsel %vm1494_vm12, %v1270_v38, %v1558_v56 }
 0x17f   : > { %v1433_v18 = vmul.f32 %v2712_v22, %v3778_v21  ;;  %vm1497_vm2 = vcmp.lt.f32.partialorder %v3778_v21, 1.0  ;;  %v1194_v42 = vmul.f32 %v3791_v23, %v3791_v23  ;;  %v1560_v41 = vsel %vm1528_vm15, %v1464_v60, 0.0 }
 0x180   : > { %v1241_v37 = vmul.f32 %v2680_v3, %v1209_v4  ;;  %v2699_v40 = vadd.f32 -4.0, %v1356_v34  ;;  %v1323_v46 = vadd.f32 2.5, %v1291_v48  ;;  %v1463_v1 = vadd.f32 2.0, %v1431_v12 }
 0x181   : > { %v2665_v47 = vadd.f32 -2.5, %v1130_v62  ;;  %v1293_v39 = vmul.f32 -0.5, %v3856_v15  ;;  %v1306_v54 = vmul.f32 -0.5, %v3858_v58  ;;  %vm1529_vm3 = vcmp.lt.f32.partialorder %v3778_v21, 2.0 }
 0x182   : > { %v1418_v51 = vmul.f32 %v2697_v32, %v3791_v23  ;;  %v2667_v26 = vadd.f32 -2.5, %v1132_v31  ;;  %v1196_v61 = vmul.f32 %v3802_v59, %v3802_v59  ;;  %v3880_v45 = vsel %vm1496_vm14, %v1272_v44, %v1560_v41 }
 0x183   : > { %v1465_v35 = vadd.f32 2.0, %v1433_v18  ;;  %v1131_v29 = vmul.f32 1.5, %v3839_v36  ;;  %v1052_v63 = vsub.f32 %v3727_v43, %v3714_v53  ;;  %v1273_v49 = vadd.f32 1.0, %v1241_v37 }
 0x184   : > { %vm1482_vm11 = vcmp.lt.f32.partialorder %v3791_v23, 1.0  ;;  %v1420_v2 = vmul.f32 %v2699_v40, %v3802_v59  ;;  %v1355_v27 = vmul.f32 %v1323_v46, %v3839_v36  ;;  %v1559_v8 = vsel %vm1527_vm1, %v1463_v1, 0.0 }
 0x185   : > { %v1226_v38 = vmul.f32 %v2665_v47, %v1194_v42  ;;  %v1325_v30 = vadd.f32 2.5, %v1293_v39  ;;  %v1338_v5 = vadd.f32 2.5, %v1306_v54  ;;  %v1450_v25 = vadd.f32 2.0, %v1418_v51 }
 0x186   : > { %vm1514_vm4 = vcmp.lt.f32.partialorder %v3791_v23, 2.0  ;;  %v1228_v56 = vmul.f32 %v2667_v26, %v1196_v61  ;;  %vm1484_vm5 = vcmp.lt.f32.partialorder %v3802_v59, 1.0  ;;  %v1561_v43 = vsel %vm1529_vm3, %v1465_v35, 0.0 }
 0x187   : > { %v2666_v44 = vadd.f32 -2.5, %v1131_v29  ;;  %v1195_v4 = vmul.f32 %v3839_v36, %v3839_v36  ;;  %v1084_v22 = vmul.f32 7.5000005, %v1052_v63  ;;  %v1591_v60 = vsel %vm1495_vm0, %v1271_v28, %v1559_v8 }
 0x188   : > { %v1452_v3 = vadd.f32 2.0, %v1420_v2  ;;  %v2698_v34 = vadd.f32 -4.0, %v1355_v27  ;;  %v1133_v48 = vmul.f32 1.5, %v3856_v15  ;;  %v1258_v12 = vadd.f32 1.0, %v1226_v38  ;;  %v3933_v27 = vld [vmem:[%s3076_s15 + $0x8] sm:$0xff]  ;;  %s4239_s15 = scalar_lea.vmem [#allocation5], %s2594_s17 }
 0x189   : > { %vm1516_vm6 = vcmp.lt.f32.partialorder %v3802_v59, 2.0  ;;  %v1357_v62 = vmul.f32 %v1325_v30, %v3856_v15  ;;  %v1370_v32 = vmul.f32 %v1338_v5, %v3858_v58  ;;  %v3904_v31 = vsel %vm1497_vm2, %v1273_v49, %v1561_v43  ;;  %s2747_s17 = sshll.u32 %s2986_s22, 8  ;;  %s2508_s25 = sshll.u32 %s4239_s15, 4  ;;  %s4357_s25 = int_to_ptr.vmem [resolvable:$true] %s2508_s25 }
 0x18a   : > { %v1546_v18 = vsel %vm1514_vm4, %v1450_v25, 0.0  ;;  %v1260_v55 = vadd.f32 1.0, %v1228_v56  ;;  %v1051_v28 = vsub.f32 %v3782_v19, %v3714_v53  ;;  %v1227_v42 = vmul.f32 %v2666_v44, %v1195_v4  ;;  %s4355_s28 = scalar_lea.hbm %s4405_s5, %s2747_s17  ;;  %s2494_s22 = scalar_lea.sflag [#allocation4], %s3070_s13 }
 0x18b   : > { %v1146_v41 = vmul.f32 1.5, %v3858_v58  ;;  %v3911_v37 = vand.u32 2147483647, %v1084_v22  ;;  %v1053_v40 = vsub.f32 %v3812_v0, %v3714_v53  ;;  %v1548_v46 = vsel %vm1516_vm6, %v1452_v3, 0.0  ;;  %s2862_s8 = scalar_lea.vmem %s4357_s25, 256  ;;  %p2869_p10 = scmp.lt.s32.totalorder %s4357_s25, %s2867_s9 }
 0x18c   : > { %v1419_v21 = vmul.f32 %v2698_v34, %v3839_v36  ;;  %v2668_v1 = vadd.f32 -2.5, %v1133_v48  ;;  %v1197_v47 = vmul.f32 %v3856_v15, %v3856_v15  ;;  %vm1483_vm7 = vcmp.lt.f32.partialorder %v3839_v36, 1.0  ;;  %p2863_p11 = scmp.ne.s32.totalorder %s4357_s25, %s2862_s8  ;;  %p2870_p2 = scmp.lt.s32.totalorder %s2868_s10, %s2862_s8 }
 0x18d   : > { %v2700_v19 = vadd.f32 -4.0, %v1357_v62  ;;  %v2713_v54 = vadd.f32 -4.0, %v1370_v32  ;;  %v1148_v51 = vmul.f32 1.5, %v3911_v37  ;;  %v3922_v61 = vsel %vm1482_vm11, %v1258_v12, %v1546_v18 }
 0x18e   : > { %vm1515_vm8 = vcmp.lt.f32.partialorder %v3839_v36, 2.0  ;;  %v1210_v0 = vmul.f32 %v3858_v58, %v3858_v58  ;;  %v1083_v35 = vmul.f32 7.5000005, %v1051_v28  ;;  %v3929_v29 = vsel %vm1484_vm5, %v1260_v55, %v1548_v46  ;;  %p2864_p13 = pnand %p2863_p11, %p4414_p12  ;;  %p2871_p4 = por %p2870_p2, %p2869_p10 }
 0x18f   : > { %v1259_v63 = vadd.f32 1.0, %v1227_v42  ;;  %v1308_v49 = vmul.f32 -0.5, %v3911_v37  ;;  %v1085_v2 = vmul.f32 7.5000005, %v1053_v40  ;;  %v1451_v8 = vadd.f32 2.0, %v1419_v21 }
 0x190   : > { %v1229_v23 = vmul.f32 %v2668_v1, %v1197_v47  ;;  %vm1517_vm9 = vcmp.lt.f32.partialorder %v3856_v15, 2.0  ;;  %v2681_v38 = vadd.f32 -2.5, %v1146_v41  ;;  %v1421_v5 = vmul.f32 %v2700_v19, %v3856_v15  ;;  %p2865_p7 = pneg %p2864_p13 }
 0x191   : > { %v1434_v25 = vmul.f32 %v2713_v54, %v3858_v58  ;;  %v2683_v56 = vadd.f32 -2.5, %v1148_v51  ;;  %v1212_v59 = vmul.f32 %v3911_v37, %v3911_v37  ;;  %v3942_v22 = vand.u32 2147483647, %v1083_v35 }
 0x192   : > { %v3946_v3 = vrot.slane %v3933_v27, %v3106_v9  ;;  %v1340_v12 = vadd.f32 2.5, %v1308_v49  ;;  %v3949_v62 = vand.u32 2147483647, %v1085_v2  ;;  %v1242_v18 = vmul.f32 %v2681_v38, %v1210_v0  ;;  %p2872_p5 = pnand %p2871_p4, %p2865_p7 }
 0x193   : > { %vm1530_vm10 = vcmp.lt.f32.partialorder %v3858_v58, 2.0  ;;  %v1547_v55 = vsel %vm1515_vm8, %v1451_v8, 0.0  ;;  %v3958_v9 = vadd.f32 1.0, %v1229_v23  ;;  %v1466_v28 = vadd.f32 2.0, %v1434_v25 }
 0x194   : > { %vm1498_vm12 = vcmp.lt.f32.partialorder %v3858_v58, 1.0  ;;  %v1307_v42 = vmul.f32 -0.5, %v3942_v22  ;;  %v1038_v41 = vsub.f32 %v3946_v3, %v3697_v57  ;;  %v1372_v21 = vmul.f32 %v1340_v12, %v3911_v37 }
 0x195   : > { %v1309_v1 = vmul.f32 -0.5, %v3949_v62  ;;  %v3968_v19 = vsel %vm1483_vm7, %v1259_v63, %v1547_v55  ;;  %v1274_v54 = vadd.f32 1.0, %v1242_v18  ;;  %vm1485_vm13 = vcmp.lt.f32.partialorder %v3856_v15, 1.0 }
 0x196   : > { %v1562_v0 = vsel %vm1530_vm10, %v1466_v28, 0.0  ;;  %v1147_v35 = vmul.f32 1.5, %v3942_v22  ;;  %v1211_v49 = vmul.f32 %v3942_v22, %v3942_v22  ;;  %v1339_v36 = vadd.f32 2.5, %v1307_v42 }
 0x197   : > { %v1070_v63 = vmul.f32 7.5000005, %v1038_v41  ;;  %v1341_v25 = vadd.f32 2.5, %v1309_v1  ;;  %vm1532_vm14 = vcmp.lt.f32.partialorder %v3911_v37, 2.0  ;;  %vm1500_vm15 = vcmp.lt.f32.partialorder %v3911_v37, 1.0 }
 0x198   : > { %v1371_v55 = vmul.f32 %v1339_v36, %v3942_v22  ;;  %vm1531_vm0 = vcmp.lt.f32.partialorder %v3942_v22, 2.0  ;;  %vm1499_vm1 = vcmp.lt.f32.partialorder %v3942_v22, 1.0  ;;  %vm1501_vm2 = vcmp.lt.f32.partialorder %v3949_v62, 1.0 }
 0x199   : > { %v3988_v28 = vand.u32 2147483647, %v1070_v63  ;;  %vm1533_vm3 = vcmp.lt.f32.partialorder %v3949_v62, 2.0 }
 0x19b   : > { %vm1518_vm11 = vcmp.lt.f32.partialorder %v3988_v28, 2.0  ;;  %vm1486_vm7 = vcmp.lt.f32.partialorder %v3988_v28, 1.0 }
 0x1b5   : > { %v1681_v39 = vpop.f32.mrb[0].mxu0 }
 0x1b6   : > { %v1683_v26 = vpop.f32.mrb[1].mxu0  ;;  %v2231_v43 = vmul.f32 %v1681_v39, %v3788_v33  ;;  %v3954_v33 = vrot.slane %v3933_v27, %v3109_v10  ;;  %v1453_v10 = vadd.f32 2.0, %v1421_v5  ;;  %v2715_v5 = vadd.f32 -4.0, %v1372_v21 }
 0x1b7   : > { %v2232_v34 = vmul.f32 %v1683_v26, %v3824_v50  ;;  %v1149_v21 = vmul.f32 1.5, %v3949_v62 }
 0x1b8   : > { %v1040_v51 = vsub.f32 %v3954_v33, %v3697_v57 }
 0x1b9   : > { %v1687_v30 = vpop.f32.mrb[2].mxu0  ;;  %v2684_v63 = vadd.f32 -2.5, %v1149_v21 }
 0x1ba   : > { %v2247_v44 = vmul.f32 %v1687_v30, %v3864_v20  ;;  %v1689_v4 = vpop.f32.mrb[3].mxu0  ;;  %v1549_v30 = vsel %vm1517_vm9, %v1453_v10, 0.0  ;;  %v1436_v10 = vmul.f32 %v2715_v5, %v3911_v37 }
 0x1bb   : > { %v2248_v48 = vmul.f32 %v1689_v4, %v1591_v60  ;;  %v1244_v60 = vmul.f32 %v2683_v56, %v1212_v59  ;;  %v1072_v4 = vmul.f32 7.5000005, %v1040_v51 }
 0x1bc   : > { %v2263_v32 = vadd.f32 %v2247_v44, %v2231_v43  ;;  %v1468_v36 = vadd.f32 2.0, %v1436_v10 }
 0x1bd   : > { %v2270_v20 = vadd.f32 %v2248_v48, %v2232_v34  ;;  %v3978_v8 = vadd.f32 1.0, %v1244_v60  ;;  %v3993_v60 = vrot.slane %v3933_v27, %v3099_v6  ;;  %v3999_v41 = vand.u32 2147483647, %v1072_v4 }
 0x1be   : > { %v2264_v50 = vrot.slane %v2263_v32, 4  ;;  %v2714_v6 = vadd.f32 -4.0, %v1371_v55 }
 0x1bf   : > { %v1758_v40 = vpop.f32.mrb[0].mxu1  ;;  %v2271_v46 = vrot.slane %v2270_v20, 4  ;;  %vm1520_vm4 = vcmp.lt.f32.partialorder %v3999_v41, 2.0  ;;  %vm1488_vm8 = vcmp.lt.f32.partialorder %v3999_v41, 1.0 }
 0x1c0   : > { %v1760_v47 = vpop.f32.mrb[1].mxu1  ;;  %v2265_v39 = vadd.f32 %v2264_v50, %v2263_v32  ;;  %v2233_v56 = vmul.f32 %v1758_v40, %v3799_v52  ;;  %v2682_v32 = vadd.f32 -2.5, %v1147_v35  ;;  %v4010_v35 = vsel %vm1485_vm13, %v3958_v9, %v1549_v30 }
 0x1c1   : > { %v2272_v26 = vadd.f32 %v2271_v46, %v2270_v20  ;;  %v2234_v34 = vmul.f32 %v1760_v47, %v3844_v11  ;;  %v1435_v5 = vmul.f32 %v2714_v6, %v3942_v22 }
 0x1c2   : > { %v2266_v2 = vrot.slane %v2265_v39, 2  ;;  %v1243_v47 = vmul.f32 %v2682_v32, %v1211_v49 }
 0x1c3   : > { %v1764_v23 = vpop.f32.mrb[2].mxu1  ;;  %v2273_v38 = vrot.slane %v2272_v26, 2  ;;  %v1467_v32 = vadd.f32 2.0, %v1435_v5  ;;  %v1055_v5 = vsub.f32 %v3993_v60, %v3714_v53 }
 0x1c4   : > { %v2267_v59 = vadd.f32 %v2266_v2, %v2265_v39  ;;  %v2249_v43 = vmul.f32 %v1764_v23, %v3880_v45  ;;  %v1766_v44 = vpop.f32.mrb[3].mxu1  ;;  %v1373_v45 = vmul.f32 %v1341_v25, %v3949_v62  ;;  %v1294_v39 = vmul.f32 -0.5, %v3988_v28 }
 0x1c5   : > { %v2274_v48 = vadd.f32 %v2273_v38, %v2272_v26  ;;  %v2250_v12 = vmul.f32 %v1766_v44, %v3904_v31  ;;  %v3997_v31 = vsel %vm1498_vm12, %v1274_v54, %v1562_v0  ;;  %v1039_v54 = vsub.f32 %v3993_v60, %v3697_v57 }
 0x1c6   : > { %v2268_v18 = vrot.slane %v2267_v59, 1  ;;  %v2277_v20 = vadd.f32 %v2249_v43, %v2233_v56  ;;  %v2716_v58 = vadd.f32 -4.0, %v1373_v45  ;;  %v1296_v2 = vmul.f32 -0.5, %v3999_v41 }
 0x1c7   : > { %v2275_v52 = vrot.slane %v2274_v48, 1  ;;  %v2284_v50 = vadd.f32 %v2250_v12, %v2234_v34  ;;  %v1213_v23 = vmul.f32 %v3949_v62, %v3949_v62  ;;  %v1326_v25 = vadd.f32 2.5, %v1294_v39 }
 0x1c8   : > { %v2269_v11 = vadd.f32 %v2268_v18, %v2267_v59  ;;  %v2278_v42 = vrot.slane %v2277_v20, 4  ;;  %v4019_v56 = vrot.slane %v3933_v27, %v3102_v7  ;;  %v1275_v9 = vadd.f32 1.0, %v1243_v47 }
 0x1c9   : > { %v2276_v40 = vadd.f32 %v2275_v52, %v2274_v48  ;;  %v2285_v46 = vrot.slane %v2284_v50, 4  ;;  %v1437_v30 = vmul.f32 %v2716_v58, %v3949_v62  ;;  %v1071_v59 = vmul.f32 7.5000005, %v1039_v54 }
 0x1ca   : > { %v2279_v1 = vadd.f32 %v2278_v42, %v2277_v20  ;;  %v1134_v44 = vmul.f32 1.5, %v3988_v28  ;;  %v1328_v4 = vadd.f32 2.5, %v1296_v2  ;;  %v1564_v48 = vsel %vm1532_vm14, %v1468_v36, 0.0 }
 0x1cb   : > { %v2391_v51 = vcombine.low %v2269_v11, %v2276_v40  ;;  %v2286_v26 = vadd.f32 %v2285_v46, %v2284_v50  ;;  %v1245_v12 = vmul.f32 %v2684_v63, %v1213_v23  ;;  %v1358_v18 = vmul.f32 %v1326_v25, %v3988_v28 }
 0x1cc   : > { %v2280_v0 = vrot.slane %v2279_v1, 2  ;;  %v1041_v20 = vsub.f32 %v4019_v56, %v3697_v57  ;;  %v1469_v52 = vadd.f32 2.0, %v1437_v30  ;;  %v4031_v50 = vand.u32 2147483647, %v1071_v59 }
 0x1cd   : > { %v2287_v49 = vrot.slane %v2286_v26, 2  ;;  %v1054_v45 = vsub.f32 %v3946_v3, %v3714_v53  ;;  %v2669_v11 = vadd.f32 -2.5, %v1134_v44  ;;  %v1198_v42 = vmul.f32 %v3988_v28, %v3988_v28 }
 0x1ce   : > { %v2281_v38 = vadd.f32 %v2280_v0, %v2279_v1  ;;  %v1360_v40 = vmul.f32 %v1328_v4, %v3999_v41  ;;  %v1056_v46 = vsub.f32 %v3954_v33, %v3714_v53  ;;  %v4041_v10 = vrot.slane %v2391_v51, %v3743_v24 }
 0x1cf   : > { %v2288_v15 = vadd.f32 %v2287_v49, %v2286_v26  ;;  %v4046_v1 = vsel %vm1500_vm15, %v3978_v8, %v1564_v48  ;;  %v1136_v3 = vmul.f32 1.5, %v3999_v41  ;;  %v1563_v47 = vsel %vm1531_vm0, %v1467_v32, 0.0 }
 0x1d0   : > { %v2282_v43 = vrot.slane %v2281_v38, 1  ;;  %v1277_v6 = vadd.f32 1.0, %v1245_v12  ;;  %v2701_v39 = vadd.f32 -4.0, %v1358_v18  ;;  %v1135_v26 = vmul.f32 1.5, %v4031_v50 }
 0x1d1   : > { %v2289_v34 = vrot.slane %v2288_v15, 1  ;;  %v1565_v51 = vsel %vm1533_vm3, %v1469_v52, 0.0  ;;  %v1295_v37 = vmul.f32 -0.5, %v4031_v50  ;;  %v1073_v8 = vmul.f32 7.5000005, %v1041_v20 }
 0x1d2   : > { %v2283_v7 = vadd.f32 %v2282_v43, %v2281_v38  ;;  %v1230_v54 = vmul.f32 %v2669_v11, %v1198_v42  ;;  %v2703_v0 = vadd.f32 -4.0, %v1360_v40  ;;  %v1086_v2 = vmul.f32 7.5000005, %v1054_v45 }
 0x1d3   : > { %v2290_v55 = vadd.f32 %v2289_v34, %v2288_v15  ;;  %v1088_v49 = vmul.f32 7.5000005, %v1056_v46  ;;  %v2671_v23 = vadd.f32 -2.5, %v1136_v3  ;;  %v1200_v38 = vmul.f32 %v3999_v41, %v3999_v41 }
 0x1d4   : > { %v1595_v25 = vsel %vm1499_vm1, %v1275_v9, %v1563_v47  ;;  %v1422_v15 = vmul.f32 %v2701_v39, %v3988_v28  ;;  %v2670_v30 = vadd.f32 -2.5, %v1135_v26  ;;  %v1199_v59 = vmul.f32 %v4031_v50, %v4031_v50 }
 0x1d5   : > { %v2392_v21 = vcombine.low %v2283_v7, %v2290_v55  ;;  %v1597_v43 = vsel %vm1501_vm2, %v1277_v6, %v1565_v51  ;;  %v1327_v44 = vadd.f32 2.5, %v1295_v37  ;;  %v4073_v4 = vand.u32 2147483647, %v1073_v8 }
 0x1d6   : > { %v4075_v48 = vadd.f32 1.0, %v1230_v54  ;;  %v1424_v22 = vmul.f32 %v2703_v0, %v3999_v41  ;;  %v4078_v60 = vand.u32 2147483647, %v1086_v2  ;;  %v4080_v9 = vand.u32 2147483647, %v1088_v49 }
 0x1d7   : > { %v4053_v33 = vrot.slane %v2392_v21, %v3743_v24  ;;  %v1232_v32 = vmul.f32 %v2671_v23, %v1200_v38  ;;  %v1087_v18 = vmul.f32 7.5000005, %v1055_v5  ;;  %v1454_v52 = vadd.f32 2.0, %v1422_v15 }
 0x1d8   : > { %v1835_v58 = vpop.f32.mrb[4].mxu0  ;;  %v1231_v45 = vmul.f32 %v2670_v30, %v1199_v59  ;;  %v1359_v42 = vmul.f32 %v1327_v44, %v4031_v50  ;;  %v1137_v40 = vmul.f32 1.5, %v4073_v4  ;;  %v1297_v46 = vmul.f32 -0.5, %v4073_v4 }
 0x1d9   : > { %v2423_v36 = vcombine.low %v4041_v10, %v4053_v33  ;;  %v1837_v63 = vpop.f32.mrb[5].mxu0  ;;  %v2235_v12 = vmul.f32 %v1835_v58, %v3922_v61  ;;  %v1456_v61 = vadd.f32 2.0, %v1424_v22  ;;  %v1312_v47 = vmul.f32 -0.5, %v4080_v9 }
 0x1da   : > { %v2236_v20 = vmul.f32 %v1837_v63, %v3968_v19  ;;  %v4090_v19 = vadd.f32 1.0, %v1232_v32  ;;  %v1201_v26 = vmul.f32 %v4073_v4, %v4073_v4  ;;  %v4094_v51 = vand.u32 2147483647, %v1087_v18 }
 0x1db   : > { %v4098_v8 = vsel %vm1518_vm11, %v1454_v52, 0.0  ;;  %v4100_v58 = vadd.f32 1.0, %v1231_v45  ;;  %v1057_v54 = vsub.f32 %v4019_v56, %v3714_v53  ;;  %v2702_v2 = vadd.f32 -4.0, %v1359_v42 }
 0x1dc   : > { %v1841_v34 = vpop.f32.mrb[6].mxu0  ;;  %v2672_v49 = vadd.f32 -2.5, %v1137_v40  ;;  %v1329_v63 = vadd.f32 2.5, %v1297_v46  ;;  %v4106_v5 = vsel %vm1520_vm4, %v1456_v61, 0.0  ;;  %v1344_v15 = vadd.f32 2.5, %v1312_v47 }
 0x1dd   : > { %v2251_v7 = vmul.f32 %v1841_v34, %v3997_v31  ;;  %v1843_v62 = vpop.f32.mrb[7].mxu0  ;;  %v1310_v31 = vmul.f32 -0.5, %v4078_v60  ;;  %v1311_v56 = vmul.f32 -0.5, %v4094_v51  ;;  %vm1519_vm5 = vcmp.lt.f32.partialorder %v4031_v50, 2.0 }
 0x1de   : > { %v2252_v55 = vmul.f32 %v1843_v62, %v1595_v25  ;;  %v1089_v62 = vmul.f32 7.5000005, %v1057_v54  ;;  %v1233_v54 = vmul.f32 %v2672_v49, %v1201_v26  ;;  %vm1521_vm6 = vcmp.lt.f32.partialorder %v4073_v4, 2.0 }
 0x1df   : > { %v2291_v11 = vadd.f32 %v2251_v7, %v2235_v12  ;;  %v1342_v25 = vadd.f32 2.5, %v1310_v31  ;;  %v1343_v42 = vadd.f32 2.5, %v1311_v56  ;;  %vm1487_vm9 = vcmp.lt.f32.partialorder %v4031_v50, 1.0 }
 0x1e0   : > { %v2298_v3 = vadd.f32 %v2252_v55, %v2236_v20  ;;  %v1361_v20 = vmul.f32 %v1329_v63, %v4073_v4  ;;  %v1150_v55 = vmul.f32 1.5, %v4078_v60  ;;  %vm1489_vm10 = vcmp.lt.f32.partialorder %v4073_v4, 1.0 }
 0x1e1   : > { %v1912_v21 = vpop.f32.mrb[4].mxu1  ;;  %v2292_v39 = vrot.slane %v2291_v11, 4  ;;  %vm1502_vm12 = vcmp.lt.f32.partialorder %v4078_v60, 1.0  ;;  %vm1534_vm13 = vcmp.lt.f32.partialorder %v4078_v60, 2.0  ;;  %vm1536_vm14 = vcmp.lt.f32.partialorder %v4080_v9, 2.0 }
 0x1e2   : > { %v1914_v6 = vpop.f32.mrb[5].mxu1  ;;  %v2299_v37 = vrot.slane %v2298_v3, 4  ;;  %v2237_v30 = vmul.f32 %v1912_v21, %v3929_v29  ;;  %v1423_v29 = vmul.f32 %v2702_v2, %v4031_v50  ;;  %v1376_v21 = vmul.f32 %v1344_v15, %v4080_v9 }
 0x1e3   : > { %v2293_v0 = vadd.f32 %v2292_v39, %v2291_v11  ;;  %v2238_v22 = vmul.f32 %v1914_v6, %v4010_v35  ;;  %v2704_v47 = vadd.f32 -4.0, %v1361_v20  ;;  %v2685_v6 = vadd.f32 -2.5, %v1150_v55 }
 0x1e4   : > { %v2300_v38 = vadd.f32 %v2299_v37, %v2298_v3  ;;  %v4120_v3 = vand.u32 2147483647, %v1089_v62  ;;  %v1265_v55 = vadd.f32 1.0, %v1233_v54  ;;  %vm1504_vm15 = vcmp.lt.f32.partialorder %v4080_v9, 1.0 }
 0x1e5   : > { %v1918_v23 = vpop.f32.mrb[6].mxu1  ;;  %v2294_v59 = vrot.slane %v2293_v0, 2  ;;  %v1425_v26 = vmul.f32 %v2704_v47, %v4073_v4  ;;  %vm1535_vm0 = vcmp.lt.f32.partialorder %v4094_v51, 2.0  ;;  %vm1503_vm1 = vcmp.lt.f32.partialorder %v4094_v51, 1.0 }
 0x1e6   : > { %v2253_v44 = vmul.f32 %v1918_v23, %v4046_v1  ;;  %v1920_v34 = vpop.f32.mrb[7].mxu1  ;;  %v2301_v12 = vrot.slane %v2300_v38, 2  ;;  %v1214_v1 = vmul.f32 %v4078_v60, %v4078_v60  ;;  %v1375_v23 = vmul.f32 %v1343_v42, %v4094_v51 }
 0x1e7   : > { %v2254_v7 = vmul.f32 %v1920_v34, %v1597_v43  ;;  %v2295_v32 = vadd.f32 %v2294_v59, %v2293_v0  ;;  %v1374_v43 = vmul.f32 %v1342_v25, %v4078_v60  ;;  %v1152_v0 = vmul.f32 1.5, %v4080_v9 }
 0x1e8   : > { %v2305_v18 = vadd.f32 %v2253_v44, %v2237_v30  ;;  %v2302_v52 = vadd.f32 %v2301_v12, %v2300_v38  ;;  %v4127_v38 = vrot.slane %v3933_v27, %v3123_v16  ;;  %v2719_v30 = vadd.f32 -4.0, %v1376_v21 }
 0x1e9   : > { %v2312_v45 = vadd.f32 %v2254_v7, %v2238_v22  ;;  %v2296_v11 = vrot.slane %v2295_v32, 1  ;;  %v2717_v63 = vadd.f32 -4.0, %v1374_v43  ;;  %v1313_v59 = vmul.f32 -0.5, %v4120_v3 }
 0x1ea   : > { %v2306_v35 = vrot.slane %v2305_v18, 4  ;;  %v2303_v40 = vrot.slane %v2302_v52, 1  ;;  %v1455_v34 = vadd.f32 2.0, %v1423_v29  ;;  %v1246_v49 = vmul.f32 %v2685_v6, %v1214_v1 }
 0x1eb   : > { %v2313_v46 = vrot.slane %v2312_v45, 4  ;;  %v2297_v61 = vadd.f32 %v2296_v11, %v2295_v32  ;;  %v2687_v22 = vadd.f32 -2.5, %v1152_v0  ;;  %v1216_v12 = vmul.f32 %v4080_v9, %v4080_v9 }
 0x1ec   : > { %v2307_v31 = vadd.f32 %v2306_v35, %v2305_v18  ;;  %v2304_v39 = vadd.f32 %v2303_v40, %v2302_v52  ;;  %v1151_v7 = vmul.f32 1.5, %v4094_v51  ;;  %v1438_v16 = vmul.f32 %v2717_v63, %v4078_v60 }
 0x1ed   : > { %v2314_v37 = vadd.f32 %v2313_v46, %v2312_v45  ;;  %v2718_v32 = vadd.f32 -4.0, %v1375_v23  ;;  %v1042_v18 = vsub.f32 %v4127_v38, %v3697_v57  ;;  %v1440_v52 = vmul.f32 %v2719_v30, %v4080_v9 }
 0x1ee   : > { %v2308_v2 = vrot.slane %v2307_v31, 2  ;;  %v2393_v25 = vcombine.low %v2297_v61, %v2304_v39  ;;  %v1345_v45 = vadd.f32 2.5, %v1313_v59  ;;  %v1551_v1 = vsel %vm1519_vm5, %v1455_v34, 0.0 }
 0x1ef   : > { %v2315_v15 = vrot.slane %v2314_v37, 2  ;;  %v1457_v11 = vadd.f32 2.0, %v1425_v26  ;;  %v1278_v43 = vadd.f32 1.0, %v1246_v49  ;;  %v2686_v42 = vadd.f32 -2.5, %v1151_v7 }
 0x1f0   : > { %v2309_v44 = vadd.f32 %v2308_v2, %v2307_v31  ;;  %v1215_v40 = vmul.f32 %v4094_v51, %v4094_v51  ;;  %v1470_v46 = vadd.f32 2.0, %v1438_v16  ;;  %v1248_v21 = vmul.f32 %v2687_v22, %v1216_v12 }
 0x1f1   : > { %v2316_v56 = vadd.f32 %v2315_v15, %v2314_v37  ;;  %v1439_v61 = vmul.f32 %v2718_v32, %v4094_v51  ;;  %v1074_v31 = vmul.f32 7.5000005, %v1042_v18  ;;  %v4150_v47 = vrot.slane %v2393_v25, %v3743_v24 }
 0x1f2   : > { %v2310_v62 = vrot.slane %v2309_v44, 1  ;;  %v1472_v39 = vadd.f32 2.0, %v1440_v52  ;;  %v1377_v37 = vmul.f32 %v1345_v45, %v4120_v3  ;;  %v1153_v54 = vmul.f32 1.5, %v4120_v3 }
 0x1f3   : > { %v2317_v20 = vrot.slane %v2316_v56, 1  ;;  %v4157_v0 = vrot.slane %v3933_v27, %v3126_v17  ;;  %v4161_v2 = vrot.slane %v3933_v27, %v3114_v13  ;;  %v1553_v23 = vsel %vm1521_vm6, %v1457_v11, 0.0 }
 0x1f4   : > { %v2311_v29 = vadd.f32 %v2310_v62, %v2309_v44  ;;  %v1247_v25 = vmul.f32 %v2686_v42, %v1215_v40  ;;  %v1566_v15 = vsel %vm1534_vm13, %v1470_v46, 0.0  ;;  %v1280_v30 = vadd.f32 1.0, %v1248_v21 }
 0x1f5   : > { %v2318_v35 = vadd.f32 %v2317_v20, %v2316_v56  ;;  %v1471_v59 = vadd.f32 2.0, %v1439_v61  ;;  %v4169_v44 = vand.u32 2147483647, %v1074_v31  ;;  %v1568_v34 = vsel %vm1536_vm14, %v1472_v39, 0.0 }
 0x1f6   : > { %v2720_v13 = vadd.f32 -4.0, %v1377_v37  ;;  %v2688_v49 = vadd.f32 -2.5, %v1153_v54  ;;  %v1217_v56 = vmul.f32 %v4120_v3, %v4120_v3  ;;  %v1044_v22 = vsub.f32 %v4157_v0, %v3697_v57 }
 0x1f7   : > { %v2394_v6 = vcombine.low %v2311_v29, %v2318_v35  ;;  %v1043_v12 = vsub.f32 %v4161_v2, %v3697_v57  ;;  %v1582_v7 = vsel %vm1486_vm7, %v4075_v48, %v4098_v8  ;;  %v4187_v62 = vsel %vm1488_vm8, %v4090_v19, %v4106_v5 }
 0x1f8   : > { %v1583_v16 = vsel %vm1487_vm9, %v4100_v58, %v1551_v1  ;;  %v1279_v18 = vadd.f32 1.0, %v1247_v25  ;;  %v4194_v20 = vsel %vm1489_vm10, %v1265_v55, %v1553_v23  ;;  %v1567_v28 = vsel %vm1535_vm0, %v1471_v59, 0.0 }
 0x1f9   : > { %v2422_v63 = vrot.slane %v2394_v6, %v3743_v24  ;;  %v1298_v48 = vmul.f32 -0.5, %v4169_v44  ;;  %v1598_v41 = vsel %vm1502_vm12, %v1278_v43, %v1566_v15  ;;  %v4202_v19 = vsel %vm1504_vm15, %v1280_v30, %v1568_v34 }
 0x1fa   : > { %v1441_v50 = vmul.f32 %v2720_v13, %v4120_v3  ;;  %vm1537_vm2 = vcmp.lt.f32.partialorder %v4120_v3, 2.0  ;;  %v1249_v4 = vmul.f32 %v2688_v49, %v1217_v56  ;;  %vm1505_vm3 = vcmp.lt.f32.partialorder %v4120_v3, 1.0 }
 0x1fb   : > { %v2424_v17 = vcombine.low %v4150_v47, %v2422_v63  ;;  %v1138_v51 = vmul.f32 1.5, %v4169_v44  ;;  %v1076_v58 = vmul.f32 7.5000005, %v1044_v22  ;;  %v1075_v5 = vmul.f32 7.5000005, %v1043_v12 }
 0x1fc   : > { %v1989_v26 = vpop.f32.mrb[8].mxu0  ;;  %v1599_v60 = vsel %vm1503_vm1, %v1279_v18, %v1567_v28  ;;  %v1058_v9 = vsub.f32 %v4127_v38, %v3714_v53  ;;  %v1330_v11 = vadd.f32 2.5, %v1298_v48  ;;  %v1003_v35 = vrot.slane %v3933_v27, %v3117_v14 }
 0x1fd   : > { %v1991_v32 = vpop.f32.mrb[9].mxu0  ;;  %v2239_v55 = vmul.f32 %v1989_v26, %v1582_v7  ;;  %v1473_v42 = vadd.f32 2.0, %v1441_v50  ;;  %v1202_v40 = vmul.f32 %v4169_v44, %v4169_v44  ;;  %v1059_v46 = vsub.f32 %v4161_v2, %v3714_v53 }
 0x1fe   : > { %v2240_v29 = vmul.f32 %v1991_v32, %v1583_v16  ;;  %v2673_v61 = vadd.f32 -2.5, %v1138_v51  ;;  %v4216_v31 = vand.u32 2147483647, %v1076_v58  ;;  %v4218_v47 = vand.u32 2147483647, %v1075_v5 }
 0x1ff   : > { %v1090_v6 = vmul.f32 7.5000005, %v1058_v9  ;;  %v2431_v14 = vrot.slane %v2423_v36, %v3743_v24  ;;  %v2438_v27 = vrot.slane %v2424_v17, %v3743_v24  ;;  %v1281_v37 = vadd.f32 1.0, %v1249_v4 }
 0x200   : > { %v1995_v8 = vpop.f32.mrb[10].mxu0  ;;  %v1362_v54 = vmul.f32 %v1330_v11, %v4169_v44  ;;  %v1140_v2 = vmul.f32 1.5, %v4216_v31  ;;  %v1569_v23 = vsel %vm1537_vm2, %v1473_v42, 0.0  ;;  %v1091_v25 = vmul.f32 7.5000005, %v1059_v46 }
 0x201   : > { %v2255_v52 = vmul.f32 %v1995_v8, %v1598_v41  ;;  %v1997_v45 = vpop.f32.mrb[11].mxu0  ;;  %v2439_v15 = vcombine.low %v2431_v14, %v2438_v27  ;;  %v1299_v10 = vmul.f32 -0.5, %v4218_v47  ;;  %v1045_v33 = vsub.f32 %v1003_v35, %v3697_v57 }
 0x202   : > { %v2256_v1 = vmul.f32 %v1997_v45, %v1599_v60  ;;  %v1060_v36 = vsub.f32 %v4157_v0, %v3714_v53  ;;  %v1234_v13 = vmul.f32 %v2673_v61, %v1202_v40  ;;  %v1204_v26 = vmul.f32 %v4216_v31, %v4216_v31 }
 0x203   : > { %v2319_v43 = vadd.f32 %v2255_v52, %v2239_v55  ;;  %v4235_v49 = vand.u32 2147483647, %v1090_v6  ;;  %2491 = vst [vmem:[%s4239_s15] sm:$0xff] %v2439_v15  ;;  %v2675_v22 = vadd.f32 -2.5, %v1140_v2  ;;  %v1300_v57 = vmul.f32 -0.5, %v4216_v31 }
 0x204   : > { %v2326_v21 = vadd.f32 %v2256_v1, %v2240_v29  ;;  %v1061_v12 = vsub.f32 %v1003_v35, %v3714_v53  ;;  %v1601_v7 = vsel %vm1505_vm3, %v1281_v37, %v1569_v23  ;;  %v2705_v16 = vadd.f32 -4.0, %v1362_v54 }
 0x205   : > { %v2320_v38 = vrot.slane %v2319_v43, 4  ;;  %v4246_v32 = vand.u32 2147483647, %v1091_v25  ;;  %v1331_v48 = vadd.f32 2.5, %v1299_v10  ;;  %v1077_v41 = vmul.f32 7.5000005, %v1045_v33 }
 0x206   : > { %v2327_v39 = vrot.slane %v2326_v21, 4  ;;  %v1092_v50 = vmul.f32 7.5000005, %v1060_v36  ;;  %v1314_v53 = vmul.f32 -0.5, %v4235_v49  ;;  %v1093_v52 = vmul.f32 7.5000005, %v1061_v12 }
 0x207   : > { %v2321_v63 = vadd.f32 %v2320_v38, %v2319_v43  ;;  %vm1522_vm11 = vcmp.lt.f32.partialorder %v4169_v44, 2.0  ;;  %v1332_v9 = vadd.f32 2.5, %v1300_v57  ;;  %v1315_v29 = vmul.f32 -0.5, %v4246_v32 }
 0x208   : > { %v2066_v30 = vpop.f32.mrb[8].mxu1  ;;  %v2328_v59 = vadd.f32 %v2327_v39, %v2326_v21  ;;  %v1363_v11 = vmul.f32 %v1331_v48, %v4218_v47  ;;  %v4258_v43 = vand.u32 2147483647, %v1077_v41  ;;  %v4260_v42 = vand.u32 2147483647, %v1092_v50 }
 0x209   : > { %v2068_v17 = vpop.f32.mrb[9].mxu1  ;;  %v2322_v34 = vrot.slane %v2321_v63, 2  ;;  %v2241_v8 = vmul.f32 %v2066_v30, %v4187_v62  ;;  %v1426_v21 = vmul.f32 %v2705_v16, %v4169_v44  ;;  %v4264_v61 = vand.u32 2147483647, %v1093_v52 }
 0x20a   : > { %v2329_v56 = vrot.slane %v2328_v59, 2  ;;  %v2242_v5 = vmul.f32 %v2068_v17, %v4194_v20  ;;  %v1346_v20 = vadd.f32 2.5, %v1314_v53  ;;  %v1236_v6 = vmul.f32 %v2675_v22, %v1204_v26 }
 0x20b   : > { %v2323_v0 = vadd.f32 %v2322_v34, %v2321_v63  ;;  %v1364_v14 = vmul.f32 %v1332_v9, %v4216_v31  ;;  %v1347_v27 = vadd.f32 2.5, %v1315_v29  ;;  %vm1490_vm4 = vcmp.lt.f32.partialorder %v4169_v44, 1.0 }
 0x20c   : > { %v2072_v18 = vpop.f32.mrb[10].mxu1  ;;  %v2330_v28 = vadd.f32 %v2329_v56, %v2328_v59  ;;  %v1203_v54 = vmul.f32 %v4218_v47, %v4218_v47  ;;  %v2706_v2 = vadd.f32 -4.0, %v1363_v11  ;;  %v1301_v23 = vmul.f32 -0.5, %v4258_v43 }
 0x20d   : > { %v2324_v4 = vrot.slane %v2323_v0, 1  ;;  %v2257_v51 = vmul.f32 %v2072_v18, %v4202_v19  ;;  %v2074_v58 = vpop.f32.mrb[11].mxu1  ;;  %v1139_v19 = vmul.f32 1.5, %v4218_v47  ;;  %v1378_v25 = vmul.f32 %v1346_v20, %v4235_v49 }
 0x20e   : > { %v2331_v3 = vrot.slane %v2330_v28, 1  ;;  %v2258_v55 = vmul.f32 %v2074_v58, %v1601_v7  ;;  %v1316_v15 = vmul.f32 -0.5, %v4260_v42  ;;  %v1266_v59 = vadd.f32 1.0, %v1234_v13 }
 0x20f   : > { %v4252_v60 = vadd.f32 %v2324_v4, %v2323_v0  ;;  %v2333_v45 = vadd.f32 %v2257_v51, %v2241_v8  ;;  %v2674_v37 = vadd.f32 -2.5, %v1139_v19  ;;  %v1458_v10 = vadd.f32 2.0, %v1426_v21 }
 0x210   : > { %v2332_v62 = vadd.f32 %v2331_v3, %v2330_v28  ;;  %v2340_v1 = vadd.f32 %v2258_v55, %v2242_v5  ;;  %v1317_v33 = vmul.f32 -0.5, %v4264_v61  ;;  %v4274_v17 = vadd.f32 1.0, %v1236_v6 }
 0x211   : > { %v2334_v35 = vrot.slane %v2333_v45, 4  ;;  %v2707_v34 = vadd.f32 -4.0, %v1364_v14  ;;  %v1379_v26 = vmul.f32 %v1347_v27, %v4246_v32  ;;  %v1235_v22 = vmul.f32 %v2674_v37, %v1203_v54 }
 0x212   : > { %v2440_v40 = vcombine.low %v4252_v60, %v2332_v62  ;;  %v2341_v46 = vrot.slane %v2340_v1, 4  ;;  %v1427_v57 = vmul.f32 %v2706_v2, %v4218_v47  ;;  %v1154_v12 = vmul.f32 1.5, %v4235_v49 }
 0x213   : > { %v2335_v38 = vadd.f32 %v2334_v35, %v2333_v45  ;;  %v1333_v7 = vadd.f32 2.5, %v1301_v23  ;;  %v2721_v16 = vadd.f32 -4.0, %v1378_v25  ;;  %v1348_v18 = vadd.f32 2.5, %v1316_v15 }
 0x214   : > { %v2342_v39 = vadd.f32 %v2341_v46, %v2340_v1  ;;  %v1554_v28 = vsel %vm1522_vm11, %v1458_v10, 0.0  ;;  %v1155_v48 = vmul.f32 1.5, %v4246_v32  ;;  %v1349_v41 = vadd.f32 2.5, %v1317_v33 }
 0x215   : > { %v2336_v63 = vrot.slane %v2335_v38, 2  ;;  %v1428_v8 = vmul.f32 %v2707_v34, %v4216_v31  ;;  %vm1523_vm5 = vcmp.lt.f32.partialorder %v4218_v47, 2.0  ;;  %v2722_v4 = vadd.f32 -4.0, %v1379_v26 }
 0x216   : > { %v2343_v30 = vrot.slane %v2342_v39, 2  ;;  %vm1524_vm6 = vcmp.lt.f32.partialorder %v4216_v31, 2.0  ;;  %v1459_v58 = vadd.f32 2.0, %v1427_v57  ;;  %vm1491_vm7 = vcmp.lt.f32.partialorder %v4218_v47, 1.0 }
 0x217   : > { %v2337_v36 = vadd.f32 %v2336_v63, %v2335_v38  ;;  %v2689_v53 = vadd.f32 -2.5, %v1154_v12  ;;  %v1218_v5 = vmul.f32 %v4235_v49, %v4235_v49  ;;  %v1365_v3 = vmul.f32 %v1333_v7, %v4258_v43 }
 0x218   : > { %v2344_v56 = vadd.f32 %v2343_v30, %v2342_v39  ;;  %v1442_v55 = vmul.f32 %v2721_v16, %v4235_v49  ;;  %v1380_v52 = vmul.f32 %v1348_v18, %v4260_v42  ;;  %v1219_v60 = vmul.f32 %v4246_v32, %v4246_v32 }
 0x219   : > { %v2338_v0 = vrot.slane %v2337_v36, 1  ;;  %v4294_v45 = vrot.slane %v2440_v40, %v3743_v24  ;;  %v2690_v29 = vadd.f32 -2.5, %v1155_v48  ;;  %v1381_v62 = vmul.f32 %v1349_v41, %v4264_v61 }
 0x21a   : > { %v2345_v13 = vrot.slane %v2344_v56, 1  ;;  %v1586_v1 = vsel %vm1490_vm4, %v1266_v59, %v1554_v28  ;;  %v1267_v19 = vadd.f32 1.0, %v1235_v22  ;;  %v1141_v11 = vmul.f32 1.5, %v4258_v43 }
 0x21b   : > { %v2339_v50 = vadd.f32 %v2338_v0, %v2337_v36  ;;  %v1443_v35 = vmul.f32 %v2722_v4, %v4246_v32  ;;  %v1460_v46 = vadd.f32 2.0, %v1428_v8  ;;  %v1250_v21 = vmul.f32 %v2689_v53, %v1218_v5 }
 0x21c   : > { %v2346_v51 = vadd.f32 %v2345_v13, %v2344_v56  ;;  %v1156_v40 = vmul.f32 1.5, %v4260_v42  ;;  %v1555_v38 = vsel %vm1523_vm5, %v1459_v58, 0.0  ;;  %v2708_v6 = vadd.f32 -4.0, %v1365_v3 }
 0x21d   : > { %v2723_v14 = vadd.f32 -4.0, %v1380_v52  ;;  %v1157_v44 = vmul.f32 1.5, %v4264_v61  ;;  %v1474_v39 = vadd.f32 2.0, %v1442_v55  ;;  %v1251_v37 = vmul.f32 %v2690_v29, %v1219_v60 }
 0x21e   : > { %v2441_v9 = vcombine.low %v2339_v50, %v2346_v51  ;;  %v2724_v54 = vadd.f32 -4.0, %v1381_v62  ;;  %v2676_v2 = vadd.f32 -2.5, %v1141_v11  ;;  %v1205_v63 = vmul.f32 %v4258_v43, %v4258_v43 }
 0x21f   : > { %vm1538_vm8 = vcmp.lt.f32.partialorder %v4235_v49, 2.0  ;;  %v1475_v23 = vadd.f32 2.0, %v1443_v35  ;;  %v1282_v25 = vadd.f32 1.0, %v1250_v21  ;;  %v2691_v15 = vadd.f32 -2.5, %v1156_v40 }
 0x220   : > { %v4302_v20 = vrot.slane %v2441_v9, %v3743_v24  ;;  %v1220_v30 = vmul.f32 %v4260_v42, %v4260_v42  ;;  %vm1539_vm9 = vcmp.lt.f32.partialorder %v4246_v32, 2.0  ;;  %vm1492_vm10 = vcmp.lt.f32.partialorder %v4216_v31, 1.0 }
 0x221   : > { %v1429_v10 = vmul.f32 %v2708_v6, %v4258_v43  ;;  %v1444_v33 = vmul.f32 %v2723_v14, %v4260_v42  ;;  %v2692_v36 = vadd.f32 -2.5, %v1157_v44  ;;  %v1221_v34 = vmul.f32 %v4264_v61, %v4264_v61 }
 0x222   : > { %v2472_v27 = vcombine.low %v4294_v45, %v4302_v20  ;;  %vm1506_vm12 = vcmp.lt.f32.partialorder %v4235_v49, 1.0  ;;  %v1570_v56 = vsel %vm1538_vm8, %v1474_v39, 0.0  ;;  %v1283_v22 = vadd.f32 1.0, %v1251_v37 }
 0x223   : > { %v2143_v59 = vpop.f32.mrb[12].mxu0  ;;  %v1445_v57 = vmul.f32 %v2724_v54, %v4264_v61  ;;  %v1556_v12 = vsel %vm1524_vm6, %v1460_v46, 0.0  ;;  %v1587_v0 = vsel %vm1491_vm7, %v1267_v19, %v1555_v38  ;;  %vm1507_vm13 = vcmp.lt.f32.partialorder %v4246_v32, 1.0 }
 0x224   : > { %v2145_v26 = vpop.f32.mrb[13].mxu0  ;;  %v1571_v7 = vsel %vm1539_vm9, %v1475_v23, 0.0  ;;  %v1237_v16 = vmul.f32 %v2676_v2, %v1205_v63  ;;  %vm1525_vm14 = vcmp.lt.f32.partialorder %v4258_v43, 2.0  ;;  %v1252_v18 = vmul.f32 %v2691_v15, %v1220_v30 }
 0x225   : > { %vm1540_vm15 = vcmp.lt.f32.partialorder %v4260_v42, 2.0  ;;  %v1461_v49 = vadd.f32 2.0, %v1429_v10  ;;  %v1602_v13 = vsel %vm1506_vm12, %v1282_v25, %v1570_v56  ;;  %v1476_v48 = vadd.f32 2.0, %v1444_v33 }
 0x226   : > { %v1253_v41 = vmul.f32 %v2692_v36, %v1221_v34  ;;  %v2243_v50 = vmul.f32 %v2143_v59, %v1586_v1  ;;  %v1603_v4 = vsel %vm1507_vm13, %v1283_v22, %v1571_v7  ;;  %v1477_v47 = vadd.f32 2.0, %v1445_v57 }
 0x227   : > { %v2149_v28 = vpop.f32.mrb[14].mxu0  ;;  %v2244_v58 = vmul.f32 %v2145_v26, %v1587_v0  ;;  %vm1493_vm0 = vcmp.lt.f32.partialorder %v4258_v43, 1.0  ;;  %vm1541_vm1 = vcmp.lt.f32.partialorder %v4264_v61, 2.0  ;;  %v1269_v5 = vadd.f32 1.0, %v1237_v16 }
 0x228   : > { %v2259_v8 = vmul.f32 %v2149_v28, %v1602_v13  ;;  %v2151_v51 = vpop.f32.mrb[15].mxu0  ;;  %v1284_v55 = vadd.f32 1.0, %v1252_v18  ;;  %vm1508_vm2 = vcmp.lt.f32.partialorder %v4260_v42, 1.0  ;;  %v1557_v52 = vsel %vm1525_vm14, %v1461_v49, 0.0 }
 0x229   : > { %v2260_v32 = vmul.f32 %v2151_v51, %v1603_v4  ;;  %v2220_v53 = vpop.f32.mrb[12].mxu1  ;;  %v1572_v9 = vsel %vm1540_vm15, %v1476_v48, 0.0  ;;  %v1285_v62 = vadd.f32 1.0, %v1253_v41  ;;  %vm1509_vm3 = vcmp.lt.f32.partialorder %v4264_v61, 1.0 }
 0x22a   : > { %v2347_v3 = vadd.f32 %v2259_v8, %v2243_v50  ;;  %v2222_v60 = vpop.f32.mrb[13].mxu1  ;;  %v1573_v19 = vsel %vm1541_vm1, %v1477_v47, 0.0  ;;  %v1588_v35 = vsel %vm1492_vm10, %v4274_v17, %v1556_v12  ;;  %v1589_v46 = vsel %vm1493_vm0, %v1269_v5, %v1557_v52 }
 0x22b   : > { %v2354_v29 = vadd.f32 %v2260_v32, %v2244_v58  ;;  %v1604_v40 = vsel %vm1508_vm2, %v1284_v55, %v1572_v9  ;;  %v2245_v6 = vmul.f32 %v2220_v53, %v1588_v35  ;;  %v1605_v44 = vsel %vm1509_vm3, %v1285_v62, %v1573_v19 }
 0x22c   : > { %v2348_v1 = vrot.slane %v2347_v3, 4  ;;  %v2246_v37 = vmul.f32 %v2222_v60, %v1589_v46  ;;  %v2480_v48 = vrot.slane %v2472_v27, %v3743_v24 }
 0x22d   : > { %v2355_v11 = vrot.slane %v2354_v29, 4  ;;  %v2226_v38 = vpop.f32.mrb[14].mxu1 }
 0x22e   : > { %v2349_v21 = vadd.f32 %v2348_v1, %v2347_v3  ;;  %v2261_v42 = vmul.f32 %v2226_v38, %v1604_v40  ;;  %v2228_v39 = vpop.f32.mrb[15].mxu1 }
 0x22f   : > { %v2356_v14 = vadd.f32 %v2355_v11, %v2354_v29  ;;  %v2262_v61 = vmul.f32 %v2228_v39, %v1605_v44 }
 0x230   : > { %v2350_v54 = vrot.slane %v2349_v21, 2  ;;  %v2361_v2 = vadd.f32 %v2261_v42, %v2245_v6 }
 0x231   : > { %v2357_v63 = vrot.slane %v2356_v14, 2  ;;  %v2368_v25 = vadd.f32 %v2262_v61, %v2246_v37 }
 0x232   : > { %v2351_v23 = vadd.f32 %v2350_v54, %v2349_v21  ;;  %v2362_v31 = vrot.slane %v2361_v2, 4 }
 0x233   : > { %v2358_v17 = vadd.f32 %v2357_v63, %v2356_v14  ;;  %v2369_v43 = vrot.slane %v2368_v25, 4 }
 0x234   : > { %v2352_v15 = vrot.slane %v2351_v23, 1  ;;  %v2363_v30 = vadd.f32 %v2362_v31, %v2361_v2 }
 0x235   : > { %v2359_v59 = vrot.slane %v2358_v17, 1  ;;  %v2370_v33 = vadd.f32 %v2369_v43, %v2368_v25 }
 0x236   : > { %v2353_v10 = vadd.f32 %v2352_v15, %v2351_v23  ;;  %v2364_v36 = vrot.slane %v2363_v30, 2 }
 0x237   : > { %v2360_v34 = vadd.f32 %v2359_v59, %v2358_v17  ;;  %v2371_v26 = vrot.slane %v2370_v33, 2 }
 0x238   : > { %v2365_v56 = vadd.f32 %v2364_v36, %v2363_v30 }
 0x239   : > { %v2442_v22 = vcombine.low %v2353_v10, %v2360_v34  ;;  %v2372_v57 = vadd.f32 %v2371_v26, %v2370_v33 }
 0x23a   : > { %v2366_v12 = vrot.slane %v2365_v56, 1 }
 0x23b   : > { %v2373_v0 = vrot.slane %v2372_v57, 1  ;;  %v2464_v18 = vrot.slane %v2442_v22, %v3743_v24 }
 0x23c   : > { %v2367_v7 = vadd.f32 %v2366_v12, %v2365_v56 }
 0x23d   : > { %v2374_v16 = vadd.f32 %v2373_v0, %v2372_v57 }
 0x23f   : > { %v2443_v49 = vcombine.low %v2367_v7, %v2374_v16 }
 0x241   : > { %v2471_v13 = vrot.slane %v2443_v49, %v3743_v24 }
 0x243   : > { %v2473_v28 = vcombine.low %v2464_v18, %v2471_v13 }
 0x245   : > { %v2487_v41 = vrot.slane %v2473_v28, %v3743_v24 }
 0x247   : > { %v2488_v50 = vcombine.low %v2480_v48, %v2487_v41 }
 0x249   : > { %2492 = vst [vmem:[%s4239_s15 + $0x8] sm:$0xff] %v2488_v50 }
 0x24a   : > { %2875 = shalt.err (!%p2872_p5)
}
 0x24b   : > { %s2876_s13 = scalar_lea.hbm %s4355_s28, 256  ;;  %s2880_s12 = scalar_lea.hbm %s4405_s5, 512 }
 0x24c   : > { %p2877_p8 = scmp.ne.s32.totalorder %s4355_s28, %s2876_s13  ;;  %p2881_p1 = scmp.lt.u32.totalorder %s4355_s28, %s4405_s5 }
 0x24d   : > { %p2882_p3 = scmp.lt.u32.totalorder %s2880_s12, %s2876_s13  ;;  %p2884_p11 = scmp.lt.u32.totalorder %s2876_s13, %s4355_s28 }
 0x24e   : > { %p2878_p9 = pnand %p2877_p8, %p4414_p12 }
 0x24f   : > { %p2883_p6 = por %p2882_p3, %p2881_p1 }
 0x250   : > { %p2879_p0 = pneg %p2878_p9 }
 0x251   : > { %p2885_p13 = por %p2884_p11, %p2883_p6 }
 0x253   : > { %p2886_p7 = pnand %p2885_p13, %p2879_p0 }
 0x255   : > { %2889 = shalt.err (!%p2886_p7)
}
 0x256   : > { %2782 = dma.vmem_to_hbm [thread:$0]  (%p4414_p12), %s4357_s25, 256, %s4355_s28, %s2494_s22  }
 0x257 PF: > { %s2520_s15 = sand.u32 1, %s2916_s18   ;;  %p4415_p10 = scmp.ne.s32.totalorder %s4410_s6, 0 }
 0x258   : > { %p4416_p2 = scmp.ge.s32.totalorder %s2928_s21, 2  ;;  %s2521_s17 = scalar_lea.sflag [#allocation4], %s2520_s15 }
 0x25a   : > { %p2789_p4 = pnand %p4416_p2, %p4415_p10 }
 0x25c   : > { %2911 = dma.done.wait (!%p2789_p4), %s2521_s17, 256  }
 0x25d   : > { %2913 = vsyncadd (!%p2789_p4), %s2521_s17, 4294967040  ;;  %p18_p5 = scmp.ge.s32.totalorder %s2990_s24, 4   ;;  %s4417_s18 = smov %s2920_s19 }
 0x25e   : > { %s4418_s19 = smov %s2924_s20  ;;  %s4419_s20 = smov %s3002_s27 }
 0x25f   : > { %s4420_s21 = smov %s2990_s24  ;;  %20 = sbr.rel (!%p18_p5) target bundleno = 5 (0x5), region = 88 }
 0x266   :  { %2526 = vsyncpa [#allocation3], 1 }
 0x267   :  { %2528 = vsyncpa [#allocation3 + $0x1], 1 }
 0x268   :  { %2529 = vsyncpa [#allocation4], 1 }
 0x269   :  { %2531 = vsyncpa [#allocation4 + $0x1], 1 }

</bundles_post_ra>
